<compile_context>
chip_gen: v7x
topology: tpu7x:2x2x1
jax: 0.10.0
libtpu: 0.0.40
codegen_flags: <defaults>
</compile_context>

<pallas_src>
import math
import functools

import numpy as np
import jax
import jax.numpy as jnp
from jax.experimental import pallas as pl
from jax.experimental.pallas import tpu as pltpu


def _cross_attn_kernel(h_ref, e_ref, m_ref,
                       wq_ref, bq_ref, wkv_ref, bkv_ref,
                       o_ref, kv_ref, *, num_heads, head_dim, attn_dtype):
    all_head = num_heads * head_dim
    tq = h_ref.shape[1]
    sk = e_ref.shape[1]
    scale = 1.0 / math.sqrt(head_dim)

    # --- K|V projection: once per batch element, cached in persistent VMEM -----
    # The Sq grid axis is "arbitrary" so every core that owns a batch element
    # also executes its i == 0 step (scratch is per-TensorCore).
    @pl.when(pl.program_id(1) == 0)
    def _():
        e = e_ref[0]                                                    # (Sk, Dc)
        kv = (jnp.dot(e, wkv_ref[...], preferred_element_type=jnp.float32)
              + bkv_ref[...].astype(jnp.float32))                       # (Sk, 2A) f32
        kv_ref[...] = kv.astype(kv_ref.dtype)
    # TODO(synk): for very long encoder sequences (Sk * 2A beyond the VMEM budget,
    # esp. v7x 64 MiB) switch to an Sk-chunked inner loop with online softmax.

    # --- Q projection (scale folded in, removes H*tq*Sk VALU multiplies) -------
    h = h_ref[0]                                                        # (tq, Dh)
    q = ((jnp.dot(h, wq_ref[...], preferred_element_type=jnp.float32)
          + bq_ref[...].astype(jnp.float32)) * scale).astype(attn_dtype)  # (tq, A)

    kv = kv_ref[...]                                                    # (Sk, 2A)
    k = kv[:, :all_head]                                                # 128-aligned slice
    v = kv[:, all_head:]

    # --- heads-batched attention (one relayout in, back-to-back MXU pushes) ----
    q3 = jnp.transpose(q.reshape(tq, num_heads, head_dim), (1, 0, 2))   # (H, tq, d)
    k3 = jnp.transpose(k.reshape(sk, num_heads, head_dim), (1, 0, 2))   # (H, Sk, d)
    v3 = jnp.transpose(v.reshape(sk, num_heads, head_dim), (1, 0, 2))   # (H, Sk, d)

    s = jnp.einsum('hqd,hkd->hqk', q3, k3,
                   preferred_element_type=jnp.float32)                  # (H, tq, Sk)
    s = s + m_ref[0].astype(jnp.float32)        # (1, Sk) broadcasts over heads & queries
    s = s - jnp.max(s, axis=-1, keepdims=True)
    p = jnp.exp(s)
    l = jnp.sum(p, axis=-1, keepdims=True)                              # (H, tq, 1)

    # Unnormalized P@V; rescale after (tq*A muls instead of H*tq*Sk) using the
    # EUP approximate reciprocal (off the VALU critical path).
    ctx = jnp.einsum('hqk,hkd->hqd', p.astype(attn_dtype), v3,
                     preferred_element_type=jnp.float32)                # (H, tq, d) f32
    ctx = ctx * pl.reciprocal(l, approx=True)
    # (attention-probs dropout is identity in eval mode)

    # Single lane-dense (tq, all_head) store (all_head is padded to 128n).
    o_ref[0] = jnp.transpose(ctx, (1, 0, 2)).reshape(tq, all_head).astype(o_ref.dtype)


def _vmem_budget_bytes():
    """Per-generation VMEM budget (v7x: 64 MiB physical; v5e/v6e: 128 MiB)."""
    try:
        cap = int(getattr(pltpu.get_tpu_info(), "vmem_capacity_bytes", 64 << 20))
    except Exception:
        cap = 64 << 20
    return cap, max(32 << 20, min(cap - (16 << 20), 112 << 20))


def cross_attention_internal(hidden, enc, mask, params, num_heads, *,
                             q_block=None, attn_dtype=jnp.bfloat16):
    B, Sq, Dh = hidden.shape
    Be, Sk, Dc = enc.shape
    assert Be == B
    all_head = params["wq"].shape[1]
    head_dim = all_head // num_heads
    assert num_heads * head_dim == all_head

    # Kernel assumes a strictly key-wise encoder mask (B, 1, 1, Sk).
    assert mask.shape == (B, 1, 1, Sk), f"expected (B,1,1,Sk) mask, got {mask.shape}"
    mask3d = mask.reshape(B, 1, Sk)

    # Pad all_head up to a multiple of 128 with zero heads -> lane-dense output
    # store; padded heads produce zero context and are sliced off afterwards.
    LANE = 128
    all_head_pad = -(-all_head // LANE) * LANE
    pad = all_head_pad - all_head
    if pad != 0 and pad % head_dim == 0:
        num_heads_eff = all_head_pad // head_dim
        pad_w = lambda w: jnp.pad(w, ((0, 0), (0, pad)))
        wq, bq = pad_w(params["wq"]), pad_w(params["bq"])
        wk, bk = pad_w(params["wk"]), pad_w(params["bk"])
        wv, bv = pad_w(params["wv"]), pad_w(params["bv"])
    else:
        # TODO(synk): head_dim does not divide the pad -> keep unpadded (masked-store) layout.
        num_heads_eff, all_head_pad = num_heads, all_head
        wq, bq = params["wq"], params["bq"]
        wk, bk, wv, bv = params["wk"], params["bk"], params["wv"], params["bv"]

    # Fused K|V weights/biases: one wide (Dc, 2A) matmul instead of two.
    wkv = jnp.concatenate([wk, wv], axis=1)
    bkv = jnp.concatenate([bk, bv], axis=1)

    vmem_cap, vmem_limit = _vmem_budget_bytes()
    if q_block is None:
        q_block = 512 if vmem_cap >= (100 << 20) else 256   # bigger tiles on 128 MiB parts
    tq = Sq if Sq <= q_block else q_block
    assert Sq % tq == 0, "pad Sq to a multiple of the query block"
    grid = (B, Sq // tq)

    kernel = functools.partial(_cross_attn_kernel, num_heads=num_heads_eff,
                               head_dim=head_dim, attn_dtype=attn_dtype)

    # TODO(synk): request single buffering (pl.Buffered(1)) for the constant
    # weight operands once verified; they are never re-fetched across grid steps.
    out = pl.pallas_call(
        kernel,
        out_shape=jax.ShapeDtypeStruct((B, Sq, all_head_pad), hidden.dtype),
        grid_spec=pltpu.PrefetchScalarGridSpec(
            num_scalar_prefetch=0,
            grid=grid,
            in_specs=[
                pl.BlockSpec((1, tq, Dh), lambda b, i: (b, i, 0)),          # hidden tile
                pl.BlockSpec((1, Sk, Dc), lambda b, i: (b, 0, 0)),          # encoder (full Sk)
                pl.BlockSpec((1, 1, Sk), lambda b, i: (b, 0, 0)),           # key-wise mask
                pl.BlockSpec((Dh, all_head_pad), lambda b, i: (0, 0)),      # Wq (resident)
                pl.BlockSpec((1, all_head_pad), lambda b, i: (0, 0)),       # bq
                pl.BlockSpec((Dc, 2 * all_head_pad), lambda b, i: (0, 0)),  # Wk|Wv fused
                pl.BlockSpec((1, 2 * all_head_pad), lambda b, i: (0, 0)),   # bk|bv fused
            ],
            out_specs=pl.BlockSpec((1, tq, all_head_pad), lambda b, i: (b, i, 0)),
            scratch_shapes=[pltpu.VMEM((Sk, 2 * all_head_pad), attn_dtype)],  # cached K|V
        ),
        compiler_params=pltpu.CompilerParams(
            # Sq axis must be "arbitrary": the cached-K|V scratch is initialized
            # at i == 0 and persists across Sq tiles of the same batch element.
            dimension_semantics=("parallel", "arbitrary"),
            vmem_limit_bytes=vmem_limit,
        ),
    )(hidden, enc, mask3d, wq, bq, wkv, bkv)

    return out[:, :, :all_head] if all_head_pad != all_head else out


def _reference(hidden, enc, mask, params, num_heads):
    """Pure-JAX f32 reference mirroring the PyTorch forward (eval mode)."""
    B, Sq, _ = hidden.shape
    _, Sk, _ = enc.shape
    all_head = params["wq"].shape[1]
    head_dim = all_head // num_heads

    q = hidden @ params["wq"] + params["bq"]
    k = enc @ params["wk"] + params["bk"]
    v = enc @ params["wv"] + params["bv"]

    def split(x, S):
        return x.reshape(B, S, num_heads, head_dim).transpose(0, 2, 1, 3)

    qh, kh, vh = split(q, Sq), split(k, Sk), split(v, Sk)
    scores = jnp.einsum("bhqd,bhkd->bhqk", qh, kh) / math.sqrt(head_dim)
    scores = scores + mask                      # (B,1,1,Sk) broadcasts
    probs = jax.nn.softmax(scores, axis=-1)
    ctx = jnp.einsum("bhqk,bhkd->bhqd", probs, vh)
    return ctx.transpose(0, 2, 1, 3).reshape(B, Sq, all_head)


if __name__ == "__main__":
    # Small config consistent with the module.
    B = 2
    Sq = 8             # query sequence length (hidden_states)
    Sk = 16            # key/value sequence length (encoder_hidden_states)
    hidden_size = 32
    ctx_hidden_size = 48
    num_heads = 4
    all_head = hidden_size            # all_head_size == hidden_size
    head_dim = all_head // num_heads

    key = jax.random.PRNGKey(0)
    keys = jax.random.split(key, 10)

    hidden = jax.random.normal(keys[0], (B, Sq, hidden_size), jnp.float32)
    enc = jax.random.normal(keys[1], (B, Sk, ctx_hidden_size), jnp.float32)

    # Additive encoder attention mask: last 3 key positions masked out.
    valid = (jnp.arange(Sk) < (Sk - 3)).astype(jnp.float32)
    mask = ((1.0 - valid) * -10000.0).reshape(1, 1, 1, Sk)
    mask = jnp.broadcast_to(mask, (B, 1, 1, Sk))

    # Deterministic parameter init (weights stored pre-transposed: (in, out)).
    params = {
        "wq": 0.02 * jax.random.normal(keys[2], (hidden_size, all_head), jnp.float32),
        "bq": 0.01 * jax.random.normal(keys[3], (1, all_head), jnp.float32),
        "wk": 0.02 * jax.random.normal(keys[4], (ctx_hidden_size, all_head), jnp.float32),
        "bk": 0.01 * jax.random.normal(keys[5], (1, all_head), jnp.float32),
        "wv": 0.02 * jax.random.normal(keys[6], (ctx_hidden_size, all_head), jnp.float32),
        "bv": 0.01 * jax.random.normal(keys[7], (1, all_head), jnp.float32),
    }

    out = cross_attention_internal(hidden, enc, mask, params, num_heads)
    out = jax.block_until_ready(out)

    ref = _reference(hidden, enc, mask, params, num_heads)
    # Tolerance accounts for bf16 operands in the attention matmuls (f32
    # accumulation) and the EUP approximate reciprocal on the softmax denominator.
    np.testing.assert_allclose(np.asarray(out), np.asarray(ref),
                               rtol=1e-2, atol=1e-2)

    # TODO(synk): training-mode attention dropout (stateful PRNG) not implemented;
    # eval-mode dropout is identity, matching the reference semantics here.
    print("KERNEL_OK")
</pallas_src>

<mosaic_0001>
module attributes {stable_mosaic.version = 11 : i64} {
  func.func @_cross_attn_kernel(%arg0: i32, %arg1: i32, %arg2: memref<1x8x32xf32, #tpu.memory_space<vmem>>, %arg3: memref<1x16x48xf32, #tpu.memory_space<vmem>>, %arg4: memref<1x1x16xf32, #tpu.memory_space<vmem>>, %arg5: memref<32x128xf32, #tpu.memory_space<vmem>>, %arg6: memref<1x128xf32, #tpu.memory_space<vmem>>, %arg7: memref<48x256xf32, #tpu.memory_space<vmem>>, %arg8: memref<1x256xf32, #tpu.memory_space<vmem>>, %arg9: memref<1x8x128xf32, #tpu.memory_space<vmem>>, %arg10: memref<16x256xbf16, #tpu.memory_space<vmem>>) attributes {dimension_semantics = [#tpu.dimension_semantics<parallel>, #tpu.dimension_semantics<arbitrary>], iteration_bounds = array<i64: 2, 1>, scalar_prefetch = 0 : i64, scratch_operands = 1 : i64, tpu.core_type = #tpu.core_type<tc>, window_params = [{transform_indices = @transform_0, window_bounds = array<i64: 1, 8, 32>}, {transform_indices = @transform_1, window_bounds = array<i64: 1, 16, 48>}, {transform_indices = @transform_2, window_bounds = array<i64: 1, 1, 16>}, {pipeline_mode = #tpu.pipeline_mode<synchronous>, transform_indices = @transform_3, window_bounds = array<i64: 32, 128>}, {pipeline_mode = #tpu.pipeline_mode<synchronous>, transform_indices = @transform_4, window_bounds = array<i64: 1, 128>}, {pipeline_mode = #tpu.pipeline_mode<synchronous>, transform_indices = @transform_5, window_bounds = array<i64: 48, 256>}, {pipeline_mode = #tpu.pipeline_mode<synchronous>, transform_indices = @transform_6, window_bounds = array<i64: 1, 256>}, {transform_indices = @transform_7, window_bounds = array<i64: 1, 8, 128>}]} {
    %c0_i32 = arith.constant 0 : i32
    %0 = arith.cmpi eq, %arg1, %c0_i32 : i32
    %1 = arith.extui %0 : i1 to i32
    %c0_i32_0 = arith.constant 0 : i32
    %2 = arith.cmpi ne, %1, %c0_i32_0 : i32
    scf.if %2 {
      %c0_20 = arith.constant 0 : index
      %c0_21 = arith.constant 0 : index
      %c0_22 = arith.constant 0 : index
      %45 = vector.load %arg3[%c0_20, %c0_21, %c0_22] : memref<1x16x48xf32, #tpu.memory_space<vmem>>, vector<1x16x48xf32>
      %46 = vector.shape_cast %45 : vector<1x16x48xf32> to vector<16x48xf32>
      %c0_23 = arith.constant 0 : index
      %c0_24 = arith.constant 0 : index
      %47 = vector.load %arg7[%c0_23, %c0_24] : memref<48x256xf32, #tpu.memory_space<vmem>>, vector<48x256xf32>
      %cst_25 = arith.constant dense<0.000000e+00> : vector<16x256xf32>
      %48 = tpu.matmul %46, %47, %cst_25 {dimension_numbers = #tpu.dot_dimension_numbers<[1], [0], [0], [1], [0, 0, 1, 1], [], []>} : vector<16x48xf32>, vector<48x256xf32>, vector<16x256xf32> -> vector<16x256xf32>
      %c0_26 = arith.constant 0 : index
      %c0_27 = arith.constant 0 : index
      %49 = vector.load %arg8[%c0_26, %c0_27] : memref<1x256xf32, #tpu.memory_space<vmem>>, vector<1x256xf32>
      %50 = vector.broadcast %49 : vector<1x256xf32> to vector<16x256xf32>
      %51 = arith.addf %48, %50 : vector<16x256xf32>
      %52 = arith.truncf %51 : vector<16x256xf32> to vector<16x256xbf16>
      %c0_28 = arith.constant 0 : index
      %c0_29 = arith.constant 0 : index
      %53 = vector.load %arg10[%c0_28, %c0_29] : memref<16x256xbf16, #tpu.memory_space<vmem>>, vector<16x256xbf16>
      tpu.vector_store %arg10[%c0_28, %c0_29], %52 {strides = array<i32>} : memref<16x256xbf16, #tpu.memory_space<vmem>>, vector<16x256xbf16>,
    } else {
    }
    %c0 = arith.constant 0 : index
    %c0_1 = arith.constant 0 : index
    %c0_2 = arith.constant 0 : index
    %3 = vector.load %arg2[%c0, %c0_1, %c0_2] : memref<1x8x32xf32, #tpu.memory_space<vmem>>, vector<1x8x32xf32>
    %4 = vector.shape_cast %3 : vector<1x8x32xf32> to vector<8x32xf32>
    %c0_3 = arith.constant 0 : index
    %c0_4 = arith.constant 0 : index
    %5 = vector.load %arg5[%c0_3, %c0_4] : memref<32x128xf32, #tpu.memory_space<vmem>>, vector<32x128xf32>
    %cst = arith.constant dense<0.000000e+00> : vector<8x128xf32>
    %6 = tpu.matmul %4, %5, %cst {dimension_numbers = #tpu.dot_dimension_numbers<[1], [0], [0], [1], [0, 0, 1, 1], [], []>} : vector<8x32xf32>, vector<32x128xf32>, vector<8x128xf32> -> vector<8x128xf32>
    %c0_5 = arith.constant 0 : index
    %c0_6 = arith.constant 0 : index
    %7 = vector.load %arg6[%c0_5, %c0_6] : memref<1x128xf32, #tpu.memory_space<vmem>>, vector<1x128xf32>
    %8 = vector.broadcast %7 : vector<1x128xf32> to vector<8x128xf32>
    %9 = arith.addf %6, %8 : vector<8x128xf32>
    %cst_7 = arith.constant 0.353553385 : f32
    %10 = vector.broadcast %cst_7 : f32 to vector<8x128xf32>
    %11 = arith.mulf %9, %10 : vector<8x128xf32>
    %12 = arith.truncf %11 : vector<8x128xf32> to vector<8x128xbf16>
    %c0_8 = arith.constant 0 : index
    %c0_9 = arith.constant 0 : index
    %13 = vector.load %arg10[%c0_8, %c0_9] : memref<16x256xbf16, #tpu.memory_space<vmem>>, vector<16x256xbf16>
    %14 = vector.extract_strided_slice %13 {offsets = [0, 0], sizes = [16, 128], strides = [1, 1]} : vector<16x256xbf16> to vector<16x128xbf16>
    %15 = vector.extract_strided_slice %13 {offsets = [0, 128], sizes = [16, 128], strides = [1, 1]} : vector<16x256xbf16> to vector<16x128xbf16>
    %16 = vector.shape_cast %12 : vector<8x128xbf16> to vector<8x16x8xbf16>
    %17 = tpu.transpose %16, [1, 0, 2] : vector<8x16x8xbf16> -> vector<16x8x8xbf16>
    %18 = vector.shape_cast %14 : vector<16x128xbf16> to vector<16x16x8xbf16>
    %19 = tpu.transpose %18, [1, 0, 2] : vector<16x16x8xbf16> -> vector<16x16x8xbf16>
    %20 = vector.shape_cast %15 : vector<16x128xbf16> to vector<16x16x8xbf16>
    %21 = tpu.transpose %20, [1, 0, 2] : vector<16x16x8xbf16> -> vector<16x16x8xbf16>
    "tpu.trace_start"() <{level = 10 : i32, message = "hqd,hkd->hqk"}> : () -> ()
    %cst_10 = arith.constant dense<0.000000e+00> : vector<16x8x16xf32>
    %22 = tpu.matmul %17, %19, %cst_10 {dimension_numbers = #tpu.dot_dimension_numbers<[2], [2], [1], [1], [0, 0, 0, 1, 1, 1], [0], [0]>} : vector<16x8x8xbf16>, vector<16x16x8xbf16>, vector<16x8x16xf32> -> vector<16x8x16xf32>
    "tpu.trace_stop"() : () -> ()
    %c0_11 = arith.constant 0 : index
    %c0_12 = arith.constant 0 : index
    %c0_13 = arith.constant 0 : index
    %23 = vector.load %arg4[%c0_11, %c0_12, %c0_13] : memref<1x1x16xf32, #tpu.memory_space<vmem>>, vector<1x1x16xf32>
    %24 = vector.shape_cast %23 : vector<1x1x16xf32> to vector<1x16xf32>
    %25 = vector.shape_cast %24 : vector<1x16xf32> to vector<1x1x16xf32>
    %26 = vector.broadcast %25 : vector<1x1x16xf32> to vector<16x8x16xf32>
    %27 = arith.addf %22, %26 : vector<16x8x16xf32>
    %cst_14 = arith.constant dense<0xFF800000> : vector<16x8xf32>
    %28 = vector.multi_reduction <maximumf>, %27, %cst_14 [2] : vector<16x8x16xf32> to vector<16x8xf32>
    %29 = vector.shape_cast %28 : vector<16x8xf32> to vector<16x8x1xf32>
    %30 = vector.broadcast %29 : vector<16x8x1xf32> to vector<16x8x16xf32>
    %31 = arith.subf %27, %30 : vector<16x8x16xf32>
    %32 = math.exp %31 : vector<16x8x16xf32>
    %cst_15 = arith.constant dense<0.000000e+00> : vector<16x8xf32>
    %33 = vector.multi_reduction <add>, %32, %cst_15 [2] : vector<16x8x16xf32> to vector<16x8xf32>
    %34 = vector.shape_cast %33 : vector<16x8xf32> to vector<16x8x1xf32>
    %35 = arith.truncf %32 : vector<16x8x16xf32> to vector<16x8x16xbf16>
    "tpu.trace_start"() <{level = 10 : i32, message = "hqk,hkd->hqd"}> : () -> ()
    %cst_16 = arith.constant dense<0.000000e+00> : vector<16x8x8xf32>
    %36 = tpu.matmul %35, %21, %cst_16 {dimension_numbers = #tpu.dot_dimension_numbers<[2], [1], [1], [2], [0, 0, 0, 1, 1, 2], [0], [0]>} : vector<16x8x16xbf16>, vector<16x16x8xbf16>, vector<16x8x8xf32> -> vector<16x8x8xf32>
    "tpu.trace_stop"() : () -> ()
    %37 = tpu.reciprocal %34 {approx = true} : vector<16x8x1xf32> -> vector<16x8x1xf32>
    %38 = vector.broadcast %37 : vector<16x8x1xf32> to vector<16x8x8xf32>
    %39 = arith.mulf %36, %38 : vector<16x8x8xf32>
    %40 = tpu.transpose %39, [1, 0, 2] : vector<16x8x8xf32> -> vector<8x16x8xf32>
    %41 = vector.shape_cast %40 : vector<8x16x8xf32> to vector<8x128xf32>
    %c0_17 = arith.constant 0 : index
    %c0_18 = arith.constant 0 : index
    %c0_19 = arith.constant 0 : index
    %42 = vector.load %arg9[%c0_17, %c0_18, %c0_19] : memref<1x8x128xf32, #tpu.memory_space<vmem>>, vector<1x8x128xf32>
    %43 = vector.shape_cast %42 : vector<1x8x128xf32> to vector<8x128xf32>
    %44 = vector.shape_cast %41 : vector<8x128xf32> to vector<1x8x128xf32>
    tpu.vector_store %arg9[%c0_17, %c0_18, %c0_19], %44 {strides = array<i32>} : memref<1x8x128xf32, #tpu.memory_space<vmem>>, vector<1x8x128xf32>,
    return
  }
  func.func @transform_0(%arg0: i32, %arg1: i32) -> (i32, i32, i32) {
    %c0_i32 = arith.constant 0 : i32
    %c0_i32_0 = arith.constant 0 : i32
    return %arg0, %arg1, %c0_i32 : i32, i32, i32
  }
  func.func @transform_1(%arg0: i32, %arg1: i32) -> (i32, i32, i32) {
    %c0_i32 = arith.constant 0 : i32
    %c0_i32_0 = arith.constant 0 : i32
    %c0_i32_1 = arith.constant 0 : i32
    return %arg0, %c0_i32, %c0_i32_0 : i32, i32, i32
  }
  func.func @transform_2(%arg0: i32, %arg1: i32) -> (i32, i32, i32) {
    %c0_i32 = arith.constant 0 : i32
    %c0_i32_0 = arith.constant 0 : i32
    %c0_i32_1 = arith.constant 0 : i32
    return %arg0, %c0_i32, %c0_i32_0 : i32, i32, i32
  }
  func.func @transform_3(%arg0: i32, %arg1: i32) -> (i32, i32) {
    %c0_i32 = arith.constant 0 : i32
    %c0_i32_0 = arith.constant 0 : i32
    %c0_i32_1 = arith.constant 0 : i32
    return %c0_i32, %c0_i32_0 : i32, i32
  }
  func.func @transform_4(%arg0: i32, %arg1: i32) -> (i32, i32) {
    %c0_i32 = arith.constant 0 : i32
    %c0_i32_0 = arith.constant 0 : i32
    %c0_i32_1 = arith.constant 0 : i32
    return %c0_i32, %c0_i32_0 : i32, i32
  }
  func.func @transform_5(%arg0: i32, %arg1: i32) -> (i32, i32) {
    %c0_i32 = arith.constant 0 : i32
    %c0_i32_0 = arith.constant 0 : i32
    %c0_i32_1 = arith.constant 0 : i32
    return %c0_i32, %c0_i32_0 : i32, i32
  }
  func.func @transform_6(%arg0: i32, %arg1: i32) -> (i32, i32) {
    %c0_i32 = arith.constant 0 : i32
    %c0_i32_0 = arith.constant 0 : i32
    %c0_i32_1 = arith.constant 0 : i32
    return %c0_i32, %c0_i32_0 : i32, i32
  }
  func.func @transform_7(%arg0: i32, %arg1: i32) -> (i32, i32, i32) {
    %c0_i32 = arith.constant 0 : i32
    %c0_i32_0 = arith.constant 0 : i32
    return %arg0, %arg1, %c0_i32 : i32, i32, i32
  }
}

</mosaic_0001>

<bundles_post_ra>
// kernel: tpu_custom_call.1
= control target key start
LH: loop header
LB: loop body
LE: loop exit
PB: predicated region body
PF: predicated region fallthrough
CT: control target
= control target key end

     0   :  { %s7138_s0 = inlined_call_operand.hbm [shape: f32[2,8,32], index: 0, kind: input, shape index: {}]   ;;  %s7139_s1 = inlined_call_operand.hbm [shape: f32[2,16,48], index: 1, kind: input, shape index: {}]   ;;  %s7140_s2 = inlined_call_operand.vmem [shape: f32[2,1,16], index: 2, kind: input, shape index: {}]   ;;  %s7141_s3 = inlined_call_operand.hbm [shape: f32[32,128], index: 3, kind: input, shape index: {}]   ;;  %s7142_s4 = inlined_call_operand.vmem [shape: f32[1,128], index: 4, kind: input, shape index: {}]   ;;  %s7143_s5 = inlined_call_operand.hbm [shape: f32[48,256], index: 5, kind: input, shape index: {}]   ;;  %s7144_s6 = inlined_call_operand.vmem [shape: f32[1,256], index: 6, kind: input, shape index: {}]   ;;  %s7145_s7 = inlined_call_operand.hbm [shape: f32[2,8,128], index: 7, kind: output, shape index: {}]  }
   0x1   :  { %7167 = sst [smem:[#allocation28_spill]] %s7138_s0 }
   0x2   :  { %7168 = sst [smem:[#allocation29_spill]] %s7141_s3 }
   0x3   :  { %7169 = sst [smem:[#allocation30_spill]] %s7143_s5 }
   0x4   :  { %12 = vsyncpa [#allocation4], 0 }
   0x5   :  { %14 = vsyncpa [#allocation4 + $0x1], 0 }
   0x6   :  { %15 = vsyncpa [#allocation7], 0 }
   0x7   :  { %17 = vsyncpa [#allocation7 + $0x1], 0 }
   0x8   :  { %18 = vsyncpa [#allocation10], 0 }
   0x9   :  { %19 = vsyncpa [#allocation5], 0 }
   0xa   :  { %21 = vsyncpa [#allocation5 + $0x1], 0  ;;  %s5624_s24 = smov 0   ;;  %s5626_s25 = smov 0  }
   0xb   :  { %s5628_s26 = smov 0   ;;  %s5630_s27 = smov 0  }
   0xc   :  { %s5632_s28 = smov 0   ;;  %s5634_s29 = smov 0  }
   0xd LB: > { %s5655_s30 = sadd.s32 4294967295, %s5552_s29   ;;  %s4801_s8 = sadd.s32 4294967294, %s5552_s29   ;;  %s5552_s29 = sphi %s5634_s29, %s27_s29   ;;  %s5548_s28 = sphi %s5632_s28, %s7226_s28   ;;  %s5544_s27 = sphi %s5630_s27, %s7225_s27   ;;  %s5540_s26 = sphi %s5628_s26, %s7224_s26   ;;  %s5536_s25 = sphi %s5626_s25, %s7223_s25   ;;  %s5532_s24 = sphi %s5624_s24, %s7222_s24  }
   0xe   : > { %p61_p0 = scmp.ne.s32.totalorder %s5536_s25, %s5532_s24  ;;  %p7146_p1 = scmp.eq.s32.totalorder %s5655_s30, 0 }
   0xf   : > { %p229_p3 = scmp.eq.s32.totalorder %s4801_s8, 1  ;;  %p4802_p5 = scmp.ge.s32.totalorder %s5552_s29, 1 }
  0x10   : > { %p5664_p4 = por %p7146_p1, %p61_p0  ;;  %p236_p7 = scmp.lt.s32.totalorder %s5552_s29, 3 }
  0x11   : > { %p5669_p6 = por %p229_p3, %p61_p0  ;;  %s5554_s12 = smov [#allocation8]  }
  0x12   : > { %s7170_s9 = scalar_select %p5664_p4, 1, 0 }
  0x13   : > { %s7171_s10 = scalar_select %p5669_p6, 1, 0 }
  0x14   : > { %p5674_p8 = pnand %p4802_p5, %p236_p7  ;;  %s248_s13 = sshll.u32 %s5554_s12, 4  ;;  %s5678_s13 = int_to_ptr.vmem [resolvable:$true] %s248_s13 }
  0x15   : > { %7172 = sst [smem:[#allocation17_spill]] %s7171_s10  ;;  %s5555_s15 = smov [#allocation9]  }
  0x16   : > { %p5179_p9 = pneg %p5674_p8  ;;  %s264_s16 = sshll.u32 %s5555_s15, 4  ;;  %s5689_s16 = int_to_ptr.vmem [resolvable:$true] %s264_s16 }
  0x17   : > { %s7175_s3 = sld [smem:[#allocation29_spill]] }
  0x18   : > { %p5685_p11 = pnand %p5179_p9, %p7146_p1 }
  0x1a   : > { %p5344_p13 = pneg %p5685_p11 }
  0x1d   : > { %s5342_s19 = scalar_lea.hbm %s7175_s3, 512 }
  0x1e   : > { %p5343_p12 = scmp.ne.s32.totalorder %s7175_s3, %s5342_s19  ;;  %p5349_p5 = scmp.lt.u32.totalorder %s5342_s19, %s7175_s3 }
  0x20   : > { %p5345_p0 = pnand %p5344_p13, %p5343_p12 }
  0x22   : > { %p5346_p3 = pneg %p5345_p0 }
  0x24   : > { %p5351_p7 = pnand %p5349_p5, %p5346_p3 }
  0x26   : > { %5354 = shalt.err (!%p5351_p7)
}
  0x27   : > { %s5355_s8 = scalar_lea.vmem %s5678_s13, 512  ;;  %p5363_p2 = scmp.lt.s32.totalorder %s5678_s13, %s5678_s13 }
  0x28   : > { %p5356_p9 = scmp.ne.s32.totalorder %s5678_s13, %s5355_s8  ;;  %p5364_p12 = scmp.lt.s32.totalorder %s5355_s8, %s5355_s8 }
  0x2a   : > { %p5358_p10 = pnand %p5356_p9, %p5344_p13  ;;  %p5365_p0 = por %p5364_p12, %p5363_p2 }
  0x2c   : > { %p5359_p1 = pneg %p5358_p10 }
  0x2e   : > { %p5366_p6 = pnand %p5365_p0, %p5359_p1 }
  0x30   : > { %5369 = shalt.err (!%p5366_p6)
}
  0x31   : > { %s7148_s12 = smov 128   ;;  %s7149_s15 = smov 8  }
  0x32   : > { %5182 = dma.hbm_to_vmem [thread:$0]  (!%p5685_p11), %s7175_s3, 512, %s5678_s13, [#allocation7], %s7148_s12, %s7148_s12, %s7149_s15  }
  0x33   : > { %s7176_s5 = sld [smem:[#allocation30_spill]] }
  0x39   : > { %s5370_s21 = scalar_lea.hbm %s7176_s5, 1536 }
  0x3a   : > { %p5371_p1 = scmp.ne.s32.totalorder %s7176_s5, %s5370_s21  ;;  %p5377_p10 = scmp.lt.u32.totalorder %s5370_s21, %s7176_s5 }
  0x3c   : > { %p5373_p2 = pnand %p5371_p1, %p5344_p13 }
  0x3e   : > { %p5374_p6 = pneg %p5373_p2 }
  0x40   : > { %p5379_p3 = pnand %p5377_p10, %p5374_p6 }
  0x42   : > { %5382 = shalt.err (!%p5379_p3)
}
  0x43   : > { %s5383_s13 = scalar_lea.vmem %s5689_s16, 1536  ;;  %p5391_p12 = scmp.lt.s32.totalorder %s5689_s16, %s5689_s16 }
  0x44   : > { %p5384_p5 = scmp.ne.s32.totalorder %s5689_s16, %s5383_s13  ;;  %p5392_p0 = scmp.lt.s32.totalorder %s5383_s13, %s5383_s13 }
  0x46   : > { %p5386_p7 = pnand %p5384_p5, %p5344_p13  ;;  %p5393_p1 = por %p5392_p0, %p5391_p12 }
  0x48   : > { %p5387_p9 = pneg %p5386_p7 }
  0x4a   : > { %p5394_p2 = pnand %p5393_p1, %p5387_p9 }
  0x4c   : > { %5397 = shalt.err (!%p5394_p2)
}
  0x4d   : > { %s5558_s10 = smov 256   ;;  %s5559_s17 = smov 16  }
  0x4e   : > { %5185 = dma.hbm_to_vmem [thread:$0]  (!%p5685_p11), %s7176_s5, 1536, %s5689_s16, [#allocation10], %s5558_s10, %s5558_s10, %s5559_s17  }
  0x4f   : > { %s39_s20 = sadd.s32 1, %s5548_s28  ;;  %s48_s21 = sadd.s32 1, %s5540_s26 }
  0x50   : > { %p41_p13 = scmp.ge.s32.totalorder %s39_s20, 2  ;;  %p55_p6 = scmp.ne.s32.totalorder %s5540_s26, %s5536_s25 }
  0x51   : > { %p56_p10 = scmp.eq.s32.totalorder %s5552_s29, 0  ;;  %p5199_p3 = scmp.lt.s32.totalorder %s5552_s29, 2 }
  0x52   : > { %s7228_s20 = smov (%p41_p13, %s39_s20), 0  ;;  %p7178_p7 = scmp.eq.s32.totalorder %s5655_s30, 1 }
  0x53   : > { %7177 = sst [smem:[#allocation18_spill]] %s7228_s20  ;;  %p57_p5 = por %p56_p10, %p55_p6 }
  0x54   : > { %p5756_p9 = por %p7178_p7, %p55_p6  ;;  %s43_s14 = ssub.s32 %s5548_s28, %s7228_s20 }
  0x55   : > { %s5763_s23 = sand.u32 1, %s5540_s26   ;;  %p46_p11 = scmp.eq.s32.totalorder %s43_s14, 0 }
  0x56   : > { %s7179_s22 = scalar_select %p5756_p9, 1, 0 }
  0x57   : > { %s4806_s16 = sshll.u32 %s5763_s23, 3  ;;  %s4807_s8 = sshll.u32 %s5548_s28, 7 }
  0x58   : > { %s5768_s13 = scalar_select %p46_p11, %s5540_s26, %s48_s21  }
  0x59   : > { %s7180_s0 = sld [smem:[#allocation28_spill]]  ;;  %s285_s19 = scalar_lea.vmem [#allocation3], %s4806_s16 }
  0x5a   : > { %s293_s12 = sshll.u32 %s285_s19, 4  ;;  %p5777_p12 = pnand %p5199_p3, %p57_p5  ;;  %s5781_s12 = int_to_ptr.vmem [resolvable:$true] %s293_s12 }
  0x5b   : > { %s282_s14 = scalar_lea.sflag [#allocation4], %s5763_s23 }
  0x5c   : > { %p5400_p1 = pneg %p5777_p12 }
  0x5f   : > { %s5773_s18 = scalar_lea.hbm %s7180_s0, %s4807_s8  ;;  %s5403_s17 = scalar_lea.hbm %s7180_s0, 256 }
  0x60   : > { %s5398_s10 = scalar_lea.hbm %s5773_s18, 128  ;;  %p5404_p6 = scmp.lt.u32.totalorder %s5773_s18, %s7180_s0 }
  0x61   : > { %p5399_p0 = scmp.ne.s32.totalorder %s5773_s18, %s5398_s10  ;;  %p5405_p10 = scmp.lt.u32.totalorder %s5403_s17, %s5398_s10 }
  0x62   : > { %p5407_p5 = scmp.lt.u32.totalorder %s5398_s10, %s5773_s18 }
  0x63   : > { %p5401_p2 = pnand %p5400_p1, %p5399_p0  ;;  %p5406_p3 = por %p5405_p10, %p5404_p6 }
  0x65   : > { %p5402_p13 = pneg %p5401_p2  ;;  %p5408_p7 = por %p5407_p5, %p5406_p3 }
  0x67   : > { %p5409_p11 = pnand %p5408_p7, %p5402_p13 }
  0x69   : > { %5412 = shalt.err (!%p5409_p11)
}
  0x6a   : > { %s5413_s21 = scalar_lea.vmem %s5781_s12, 128  ;;  %s5560_s16 = smov [#allocation3]  }
  0x6b   : > { %p5414_p0 = scmp.ne.s32.totalorder %s5781_s12, %s5413_s21  ;;  %s5418_s8 = sshll.u32 %s5560_s16, 4  ;;  %s5419_s8 = int_to_ptr.vmem [resolvable:$false] %s5418_s8 }
  0x6c   : > { %s5420_s3 = scalar_lea.vmem %s5419_s8, 256  ;;  %p5421_p4 = scmp.lt.s32.totalorder %s5781_s12, %s5419_s8 }
  0x6d   : > { %p5416_p2 = pnand %p5414_p0, %p5400_p1  ;;  %p5422_p6 = scmp.lt.s32.totalorder %s5420_s3, %s5413_s21 }
  0x6f   : > { %p5417_p9 = pneg %p5416_p2  ;;  %p5423_p10 = por %p5422_p6, %p5421_p4 }
  0x71   : > { %p5424_p3 = pnand %p5423_p10, %p5417_p9 }
  0x73   : > { %5427 = shalt.err (!%p5424_p3)
}
  0x74   : > { %5189 = dma.hbm_to_vmem [thread:$0]  (!%p5777_p12), %s5773_s18, 128, %s5781_s12, %s282_s14  }
  0x75   : > { %s4874_s10 = sshll.u32 %s5548_s28, 8  ;;  %s7182_s17 = sshll.u32 %s5763_s23, 4 }
  0x76   : > { %s304_s19 = scalar_lea.vmem [#allocation6], %s7182_s17  ;;  %s300_s8 = sand.u32 1, %s5552_s29  }
  0x77   : > { %s311_s16 = sshll.u32 %s304_s19, 4  ;;  %s5819_s0 = scalar_lea.hbm %s7139_s1, %s4874_s10  ;;  %s5813_s16 = int_to_ptr.vmem [resolvable:$true] %s311_s16 }
  0x78   : > { %s5821_s5 = scalar_lea.sflag [#allocation7], %s300_s8  ;;  %s5428_s20 = scalar_lea.hbm %s5819_s0, 256 }
  0x79   : > { %p5429_p4 = scmp.ne.s32.totalorder %s5819_s0, %s5428_s20  ;;  %s5433_s18 = scalar_lea.hbm %s7139_s1, 512 }
  0x7a   : > { %p5434_p5 = scmp.lt.u32.totalorder %s5819_s0, %s7139_s1  ;;  %p5435_p7 = scmp.lt.u32.totalorder %s5433_s18, %s5428_s20 }
  0x7b   : > { %p5431_p9 = pnand %p5429_p4, %p5400_p1  ;;  %p5437_p0 = scmp.lt.u32.totalorder %s5428_s20, %s5819_s0 }
  0x7c   : > { %p5436_p11 = por %p5435_p7, %p5434_p5 }
  0x7d   : > { %p5432_p13 = pneg %p5431_p9 }
  0x7e   : > { %p5438_p2 = por %p5437_p0, %p5436_p11 }
  0x80   : > { %p5439_p6 = pnand %p5438_p2, %p5432_p13 }
  0x82   : > { %5442 = shalt.err (!%p5439_p6)
}
  0x83   : > { %s5443_s10 = scalar_lea.vmem %s5813_s16, 256  ;;  %s5561_s19 = smov [#allocation6]  }
  0x84   : > { %p5444_p10 = scmp.ne.s32.totalorder %s5813_s16, %s5443_s10  ;;  %s5448_s8 = sshll.u32 %s5561_s19, 4  ;;  %s5449_s8 = int_to_ptr.vmem [resolvable:$false] %s5448_s8 }
  0x85   : > { %s5450_s21 = scalar_lea.vmem %s5449_s8, 512  ;;  %p5451_p9 = scmp.lt.s32.totalorder %s5813_s16, %s5449_s8 }
  0x86   : > { %p5446_p3 = pnand %p5444_p10, %p5400_p1  ;;  %p5452_p5 = scmp.lt.s32.totalorder %s5450_s21, %s5443_s10 }
  0x88   : > { %p5447_p4 = pneg %p5446_p3  ;;  %p5453_p7 = por %p5452_p5, %p5451_p9 }
  0x8a   : > { %p5454_p11 = pnand %p5453_p7, %p5447_p4 }
  0x8c   : > { %5457 = shalt.err (!%p5454_p11)
}
  0x8d   : > { %s7183_s20 = smov 8   ;;  %s7184_s3 = smov 128  }
  0x8e   : > { %5192 = dma.hbm_to_vmem [thread:$0]  (!%p5777_p12), %s5819_s0, 256, %s5813_s16, %s5821_s5, %s7184_s3, %s7184_s3, %s7183_s20  }
  0x8f   : > { %329 = sbr.rel (%p5674_p8) target bundleno = 1425 (0x591), region = 48 }
  0x96   : > { %s5853_s12 = sand.u32 1, %s5536_s25   ;;  %p7185_p1 = scmp.ne.s32.totalorder %s7170_s9, 0 }
  0x97   : > { %s7164_s23 = sshll.u32 %s5853_s12, 3  ;;  %s332_s18 = scalar_lea.sflag [#allocation4], %s5853_s12 }
  0x98   : > { %s5859_s15 = scalar_lea.vmem [#allocation3], %s7164_s23 }
  0x99   : > { %5511 = dma.done.wait (%p7185_p1), %s332_s18, 128  }
  0x9a   : > { %5513 = vsyncadd (%p7185_p1), %s332_s18, 4294967168  ;;  %s340_s0 = sand.u32 1, %s5655_s30   ;;  %s4813_s5 = sshll.u32 %s5853_s12, 4 }
  0x9b   : > { %s341_s11 = scalar_lea.sflag [#allocation7], %s340_s0  ;;  %s5867_s16 = scalar_lea.vmem [#allocation6], %s4813_s5 }
  0x9c   : > { %5515 = dma.done.wait (%p7185_p1), %s341_s11, 256  }
  0x9d   : > { %5517 = vsyncadd (%p7185_p1), %s341_s11, 4294967040  ;;  %p7186_p8 = scmp.eq.s32.totalorder %s5655_s30, 0 }
  0x9f   : > { %5519 = dma.done.wait (%p7186_p8), [#allocation7], 512   ;;  %p7187_p12 = pmov %p7186_p8 }
  0xa0   : > { %p7188_p13 = pmov %p7186_p8 }
  0xa1   : > { %5521 = vsyncadd (%p7187_p12), [#allocation7], 4294966784 }
  0xa2   : > { %5523 = dma.done.wait (%p7188_p13), [#allocation10], 1536   ;;  %p7189_p0 = pmov %p7186_p8 }
  0xa3   : > { %v5562_v0 = vmov 0.0|0.0   ;;  %vm5563_vm0 = vmmov 0   ;;  %v7153_v1 = vmov 0.0   ;;  %v514_v2 = vld [vmem:[#allocation8] sm:$0xff]  ;;  %v515_v3 = vld [vmem:[#allocation8 + $0x8] sm:$0xff]  ;;  %v404_v6 = vld [vmem:[#allocation9 + $0x18] sm:$0xff]  ;;  %v415_v29 = vlaneseq }
  0xa4   : > { %5525 = vsyncadd (%p7189_p0), [#allocation10], 4294965760  ;;  %5159 = vmatprep.subr.bf16.mxu1 %v5562_v0  ;;  %4952 = vmatprep.mubr.msk.f32.mxu1 %vm5563_vm0, %v7153_v1  ;;  %v402_v4 = vld [vmem:[#allocation9 + $0x8] sm:$0xff]  ;;  %v5160_v5 = vpack.c.bf16 %v515_v3, %v514_v2  ;;  %v516_v7 = vld [vmem:[#allocation8 + $0x10] sm:$0xff]  ;;  %vm525_vm1 = vcmask 261120   ;;  %vm425_vm2 = vcmask 392192  }
  0xa5   : > { %496 = vmatprep.mubr.f32.mxu0 %v7153_v1  ;;  %v517_v8 = vld [vmem:[#allocation8 + $0x18] sm:$0xff]  ;;  %v5147_v9 = vpack.c.bf16 %v404_v6, %v402_v4  ;;  %v401_v10 = vld [vmem:[#allocation9] sm:$0xff]  ;;  %v403_v11 = vld [vmem:[#allocation9 + $0x10] sm:$0xff]  ;;  %v5897_v30 = vshrl.u32 %v415_v29, 7  ;;  %s7165_s10 = smov 112   ;;  %s7166_s19 = smov 120  }
  0xa6   : > { %5161 = vmatpush3.bf16.msra.mxu1 %v5160_v5  ;;  %v5163_v12 = vpack.c.bf16 %v517_v8, %v516_v7  ;;  %v5149_v13 = vpack.c.bf16 %v403_v11, %v401_v10  ;;  %v406_v14 = vld [vmem:[#allocation9 + $0x28] sm:$0xff]  ;;  %v408_v15 = vld [vmem:[#allocation9 + $0x38] sm:$0xff]  ;;  %v405_v16 = vld [vmem:[#allocation9 + $0x20] sm:$0xff]  ;;  %s5567_s8 = smov 96   ;;  %s5568_s21 = smov 104   ;;  %vm2404_vm3 = vcmask 64512  }
  0xa7   : > { %5162 = vmatprep.subr.bf16.mxu1 %v5562_v0  ;;  %5148 = vmatprep.subr.bf16.mxu0 %v5147_v9  ;;  %v5151_v17 = vpack.c.bf16 %v408_v15, %v406_v14  ;;  %v407_v18 = vld [vmem:[#allocation9 + $0x30] sm:$0xff]  ;;  %v410_v19 = vld [vmem:[#allocation9 + $0x48] sm:$0xff]  ;;  %v412_v20 = vld [vmem:[#allocation9 + $0x58] sm:$0xff]  ;;  %v417_v35 = vsub.s32 0, %v5897_v30  ;;  %v421_v37 = vsub.s32 1, %v5897_v30  ;;  %s5569_s20 = smov 80  }
  0xa8   : > { %5150 = vmatpush1.bf16.msra.mxu0 %v5149_v13  ;;  %v5153_v21 = vpack.c.bf16 %v407_v18, %v405_v16  ;;  %v5155_v22 = vpack.c.bf16 %v412_v20, %v410_v19  ;;  %v409_v23 = vld [vmem:[#allocation9 + $0x40] sm:$0xff]  ;;  %v411_v24 = vld [vmem:[#allocation9 + $0x50] sm:$0xff]  ;;  %v400_v28 = vld [vmem:[%s5867_s16 + $0x8] sm:$0xff]  ;;  %s5570_s3 = smov 88   ;;  %s5571_s18 = smov 64   ;;  %vm3141_vm4 = vcmask 130048  }
  0xa9   : > { %5152 = vmatprep.subr.bf16.mxu0 %v5151_v17  ;;  %v513_v25 = vld [vmem:[%s5859_s15] sm:$0xff]  ;;  %v5157_v26 = vpack.c.bf16 %v411_v24, %v409_v23  ;;  %v399_v27 = vld [vmem:[%s5867_s16] sm:$0xff]  ;;  %s5572_s15 = smov 72   ;;  %s5573_s0 = smov 56   ;;  %v5580_v0 = vmov 1983009808  }
  0xaa   : > { %5164 = vmatpush3.bf16.msra.mxu1 %v5163_v12  ;;  %v4819_v31 = vld [vmem:[%s7142_s4] ss:$0 sm:$0xff]  ;;  %s5574_s5 = smov 48   ;;  %s5575_s11 = smov 40   ;;  %v651_v2 = vunpack.c.l.s4 %v5580_v0  ;;  %v5581_v6 = vmov 1934713408  }
  0xab   : > { %4955 = vmatprep.subr.bf16.mxu1 %v7153_v1  ;;  %v413_v36 = vld [vmem:[%s7144_s6] sm:$0x3]  ;;  %s5576_s16 = smov 32   ;;  %s5577_s30 = smov 24   ;;  %v684_v7 = vunpack.c.l.s4 %v5581_v6  ;;  %vm4628_vm5 = vcmask 195584   ;;  %vm4631_vm6 = vcmask 326656  }
  0xac   : > { %5154 = vmatpush1.bf16.msra.mxu0 %v5153_v21  ;;  %v418_v40 = vrot.slane %v413_v36, %v417_v35  ;;  %v422_v42 = vrot.slane %v413_v36, %v421_v37  ;;  %s5578_s9 = smov 16   ;;  %s5579_s14 = smov 8   ;;  %v652_v5 = vunpack.c.0.s8 %v651_v2  ;;  %vm4635_vm7 = vcmask 457728  }
  0xad   : > { %4953 = vmatmul.mubr.msk.f32.vlgmr.msra.gmra.mrb[0].mxu1 %vm525_vm1, %v513_v25  ;;  %5156 = vmatprep.subr.bf16.mxu0 %v5155_v22  ;;  %v685_v15 = vunpack.c.0.s8 %v684_v7  ;;  %p391_p2 = scmp.lt.s32.totalorder %s5544_s27, 1  ;;  %s7214_s23 = smov 120   ;;  %vm4637_vm8 = vcmask 523264   ;;  %vm4639_vm9 = vcmask 588800   ;;  %vm4641_vm10 = vcmask 654336  }
  0xae   : > { %4957 = vmatprep.mubr.msk.bf16.mxu1 %vm5563_vm0, %v7153_v1  ;;  %v6010_v12 = vsub.s32 %v652_v5, %v5897_v30  ;;  %vm4643_vm11 = vcmask 719872   ;;  %vm4645_vm12 = vcmask 785408   ;;  %vm4647_vm13 = vcmask 850944   ;;  %p7217_p10 = scmp.ne.s32.totalorder %s7179_s22, 0 }
  0xaf   : > { %v6018_v22 = vsub.s32 %v685_v15, %v5897_v30  ;;  %s392_s17 = scalar_select %p391_p2, %s5544_s27, 1  ;;  %vm4649_vm14 = vcmask 916480   ;;  %vm4651_vm15 = vcmask 982016  }
  0xb0   : > { %5158 = vmatpush1.bf16.msra.mxu0 %v5157_v26 }
  0xb1   : > { %4961 = vmatprep.subr.bf16.mxu0 %v7153_v1 }
  0xb3   : > { %4817 = vmatmul.mubr.msk.f32.vlgmr.msra.gmra.mrb[0].mxu0 %vm425_vm2, %v399_v27 }
  0xb4   : > { %502 = vmatprep.mubr.f32.mxu0 %v7153_v1 }
  0xb7   : > { %4818 = vmatmul.mubr.msk.f32.gmra.mrb[2].mxu0 %vm425_vm2, %v400_v28 }
  0xb8   : > { %4963 = vmatprep.mubr.msk.bf16.mxu0 %vm5563_vm0, %v7153_v1 }
 0x180   : > { %v595_v32 = vpop.f32.mrb[0].mxu1 }
 0x181   : > { %v596_v33 = vadd.f32 %v4819_v31, %v595_v32  ;;  %v4954_v34 = vpop.f32.mrb[1].mxu1 }
 0x183   : > { %v599_v38 = vmul.f32 0.35355338, %v596_v33 }
 0x185   : > { %v5907_v39 = vpack.c.bf16 %v599_v38, %v599_v38 }
 0x186   : > { %v498_v41 = vpop.f32.mrb[0].mxu0 }
 0x187   : > { %607 = vrot.lane.b32.xlu0 %v5907_v39, %s7165_s10  ;;  %604 = vrot.lane.b32.xlu1 %v5907_v39, %s7166_s19  ;;  %v500_v43 = vpop.f32.mrb[1].mxu0  ;;  %v499_v44 = vadd.f32 %v498_v41, %v418_v40 }
 0x188   : > { %v501_v45 = vadd.f32 %v500_v43, %v422_v42 }
 0x18a   : > { %v504_v46 = vpop.f32.mrb[2].mxu0 }
 0x18b   : > { %613 = vrot.lane.b32.xlu0 %v5907_v39, %s5567_s8  ;;  %610 = vrot.lane.b32.xlu1 %v5907_v39, %s5568_s21  ;;  %v505_v47 = vadd.f32 %v504_v46, %v418_v40  ;;  %v506_v48 = vpop.f32.mrb[3].mxu0 }
 0x18c   : > { %v507_v49 = vadd.f32 %v506_v48, %v422_v42 }
 0x18d   : > { %v5917_v50 = vpack.c.bf16 %v505_v47, %v499_v44 }
 0x18e   : > { %v5919_v51 = vpack.c.bf16 %v507_v49, %v501_v45 }
 0x18f   : > { %619 = vrot.lane.b32.xlu0 %v5907_v39, %s5569_s20  ;;  %616 = vrot.lane.b32.xlu1 %v5907_v39, %s5570_s3 }
 0x193   : > { %625 = vrot.lane.b32.xlu0 %v5907_v39, %s5571_s18  ;;  %622 = vrot.lane.b32.xlu1 %v5907_v39, %s5572_s15 }
 0x197   : > { %628 = vrot.lane.b32.xlu1 %v5907_v39, %s5573_s0  ;;  %978 = vrot.lane.b32.xlu0 %v5917_v50, %s7166_s19 }
 0x19b   : > { %984 = vrot.lane.b32.xlu1 %v5917_v50, %s5568_s21  ;;  %981 = vrot.lane.b32.xlu0 %v5917_v50, %s7165_s10 }
 0x19f   : > { %987 = vrot.lane.b32.xlu1 %v5917_v50, %s5567_s8  ;;  %990 = vrot.lane.b32.xlu0 %v5917_v50, %s5570_s3 }
 0x1a3   : > { %993 = vrot.lane.b32.xlu1 %v5917_v50, %s5569_s20  ;;  %996 = vrot.lane.b32.xlu0 %v5917_v50, %s5572_s15 }
 0x1a7   : > { %999 = vrot.lane.b32.xlu1 %v5917_v50, %s5571_s18  ;;  %1002 = vrot.lane.b32.xlu0 %v5917_v50, %s5573_s0 }
 0x1ab   : > { %1005 = vrot.lane.b32.xlu1 %v5917_v50, %s5574_s5  ;;  %1008 = vrot.lane.b32.xlu0 %v5917_v50, %s5575_s11 }
 0x1af   : > { %1011 = vrot.lane.b32.xlu1 %v5917_v50, %s5576_s16  ;;  %1014 = vrot.lane.b32.xlu0 %v5917_v50, %s5577_s30 }
 0x1b3   : > { %1017 = vrot.lane.b32.xlu1 %v5917_v50, %s5578_s9  ;;  %1020 = vrot.lane.b32.xlu0 %v5917_v50, %s5579_s14 }
 0x1b7   : > { %634 = vrot.lane.b32.xlu1 %v5907_v39, %s5575_s11  ;;  %631 = vrot.lane.b32.xlu0 %v5907_v39, %s5574_s5 }
 0x1bb   : > { %640 = vrot.lane.b32.xlu1 %v5907_v39, %s5577_s30  ;;  %637 = vrot.lane.b32.xlu0 %v5907_v39, %s5576_s16 }
 0x1bf   : > { %646 = vrot.lane.b32.xlu1 %v5907_v39, %s5579_s14  ;;  %643 = vrot.lane.b32.xlu0 %v5907_v39, %s5578_s9 }
 0x1c3   : > { %1683 = vrot.lane.b32.xlu1 %v5919_v51, %s7165_s10  ;;  %1680 = vrot.lane.b32.xlu0 %v5919_v51, %s7166_s19  ;;  %s393_s19 = scalar_lea.vmem %s7140_s2, %s392_s17  ;;  %s7215_s10 = smov 112  }
 0x1c7   : > { %1689 = vrot.lane.b32.xlu1 %v5919_v51, %s5567_s8  ;;  %1686 = vrot.lane.b32.xlu0 %v5919_v51, %s5568_s21 }
 0x1cb   : > { %1695 = vrot.lane.b32.xlu1 %v5919_v51, %s5569_s20  ;;  %1692 = vrot.lane.b32.xlu0 %v5919_v51, %s5570_s3 }
 0x1cf   : > { %1701 = vrot.lane.b32.xlu1 %v5919_v51, %s5571_s18  ;;  %1698 = vrot.lane.b32.xlu0 %v5919_v51, %s5572_s15 }
 0x1d3   : > { %1707 = vrot.lane.b32.xlu1 %v5919_v51, %s5574_s5  ;;  %1704 = vrot.lane.b32.xlu0 %v5919_v51, %s5573_s0 }
 0x1d7   : > { %1713 = vrot.lane.b32.xlu1 %v5919_v51, %s5576_s16  ;;  %1710 = vrot.lane.b32.xlu0 %v5919_v51, %s5575_s11 }
 0x1db   : > { %1719 = vrot.lane.b32.xlu1 %v5919_v51, %s5578_s9  ;;  %1716 = vrot.lane.b32.xlu0 %v5919_v51, %s5577_s30 }
 0x1df   : > { %1722 = vrot.lane.b32.xlu0 %v5919_v51, %s5579_s14 }
 0x1f9   : > { %v608_v52 = vpop.permute.xlu0 %607  ;;  %v605_v53 = vpop.permute.xlu1 %604 }
 0x1fd   : > { %v614_v54 = vpop.permute.xlu0 %613  ;;  %v611_v55 = vpop.permute.xlu1 %610 }
 0x1fe   : > { %v649_v13 = vcombine.low %v5907_v39, %v614_v54 }
 0x200   : > { %v656_v20 = vrot.slane %v649_v13, %v6010_v12 }
 0x201   : > { %v620_v56 = vpop.permute.xlu0 %619  ;;  %v617_v57 = vpop.permute.xlu1 %616 }
 0x202   : > { %v657_v10 = vcombine.low %v608_v52, %v620_v56  ;;  %v717_v14 = vcombine.low %v605_v53, %v617_v57 }
 0x204   : > { %v664_v18 = vrot.slane %v657_v10, %v6010_v12  ;;  %v724_v21 = vrot.slane %v717_v14, %v6010_v12 }
 0x205   : > { %v6003_v58 = vpop.permute.xlu0 %625  ;;  %v623_v59 = vpop.permute.xlu1 %622 }
 0x206   : > { %v725_v11 = vcombine.low %v611_v55, %v623_v59  ;;  %v681_v25 = vcombine.low %v656_v20, %v664_v18  ;;  %v682_v26 = vcombine.high %v656_v20, %v664_v18 }
 0x208   : > { %v732_v19 = vrot.slane %v725_v11, %v6010_v12  ;;  %v6024_v30 = vrot.slane %v681_v25, %v6018_v22  ;;  %v6027_v39 = vrot.slane %v682_v26, %v6018_v22 }
 0x209   : > { %v6005_v60 = vpop.permute.xlu1 %628  ;;  %v979_v61 = vpop.permute.xlu0 %978 }
 0x20a   : > { %v749_v27 = vcombine.low %v724_v21, %v732_v19  ;;  %v750_v28 = vcombine.high %v724_v21, %v732_v19 }
 0x20c   : > { %v6030_v40 = vrot.slane %v749_v27, %v6018_v22  ;;  %v6033_v41 = vrot.slane %v750_v28, %v6018_v22 }
 0x20d   : > { %v6007_v62 = vpop.permute.xlu1 %984  ;;  %v982_v63 = vpop.permute.xlu0 %981 }
 0x211   : > { %v988_v3 = vpop.permute.xlu1 %987  ;;  %v991_v4 = vpop.permute.xlu0 %990 }
 0x212   : > { %v1023_v31 = vcombine.low %v5917_v50, %v988_v3  ;;  %v1024_v32 = vcombine.high %v5917_v50, %v988_v3  ;;  %v1159_v33 = vcombine.low %v979_v61, %v991_v4  ;;  %v1160_v34 = vcombine.high %v979_v61, %v991_v4 }
 0x214   : > { %v1031_v46 = vrot.slane %v1023_v31, %v6010_v12  ;;  %v1038_v47 = vrot.slane %v1024_v32, %v6010_v12  ;;  %v1167_v48 = vrot.slane %v1159_v33, %v6010_v12  ;;  %v6041_v49 = vrot.slane %v1160_v34, %v6010_v12 }
 0x215   : > { %v994_v8 = vpop.permute.xlu1 %993  ;;  %v997_v9 = vpop.permute.xlu0 %996 }
 0x216   : > { %v1039_v29 = vcombine.low %v982_v63, %v994_v8  ;;  %v1040_v35 = vcombine.high %v982_v63, %v994_v8  ;;  %v1175_v36 = vcombine.low %v6007_v62, %v997_v9  ;;  %v1176_v43 = vcombine.high %v6007_v62, %v997_v9 }
 0x218   : > { %v1047_v42 = vrot.slane %v1039_v29, %v6010_v12  ;;  %v1054_v50 = vrot.slane %v1040_v35, %v6010_v12  ;;  %v1183_v52 = vrot.slane %v1175_v36, %v6010_v12  ;;  %v1190_v0 = vrot.slane %v1176_v43, %v6010_v12 }
 0x219   : > { %v1000_v16 = vpop.permute.xlu1 %999  ;;  %v1003_v17 = vpop.permute.xlu0 %1002 }
 0x21a   : > { %v1087_v63 = vcombine.low %v1031_v46, %v1047_v42  ;;  %v1088_v8 = vcombine.high %v1031_v46, %v1047_v42  ;;  %v1103_v9 = vcombine.low %v1038_v47, %v1054_v50  ;;  %v1104_v15 = vcombine.high %v1038_v47, %v1054_v50 }
 0x21b   : > { %v1224_v25 = vcombine.high %v1167_v48, %v1183_v52  ;;  %v1239_v26 = vcombine.low %v6041_v49, %v1190_v0  ;;  %v1240_v29 = vcombine.high %v6041_v49, %v1190_v0 }
 0x21c   : > { %v1095_v28 = vrot.slane %v1087_v63, %v6018_v22  ;;  %v1102_v35 = vrot.slane %v1088_v8, %v6018_v22  ;;  %v1111_v36 = vrot.slane %v1103_v9, %v6018_v22  ;;  %v1118_v42 = vrot.slane %v1104_v15, %v6018_v22 }
 0x21d   : > { %v1006_v23 = vpop.permute.xlu1 %1005  ;;  %v1009_v24 = vpop.permute.xlu0 %1008  ;;  %v1238_v47 = vrot.slane %v1224_v25, %v6018_v22  ;;  %v1247_v50 = vrot.slane %v1239_v26, %v6018_v22 }
 0x221   : > { %v1012_v37 = vpop.permute.xlu1 %1011  ;;  %v1015_v38 = vpop.permute.xlu0 %1014 }
 0x222   : > { %v1055_v44 = vcombine.low %v1000_v16, %v1012_v37  ;;  %v1056_v45 = vcombine.high %v1000_v16, %v1012_v37  ;;  %v1191_v53 = vcombine.low %v1003_v17, %v1015_v38  ;;  %v1192_v54 = vcombine.high %v1003_v17, %v1015_v38 }
 0x224   : > { %v1063_v2 = vrot.slane %v1055_v44, %v6010_v12  ;;  %v1070_v3 = vrot.slane %v1056_v45, %v6010_v12  ;;  %v1199_v10 = vrot.slane %v1191_v53, %v6010_v12  ;;  %v1206_v11 = vrot.slane %v1192_v54, %v6010_v12 }
 0x225   : > { %v1018_v55 = vpop.permute.xlu1 %1017  ;;  %v1021_v56 = vpop.permute.xlu0 %1020 }
 0x226   : > { %v1071_v57 = vcombine.low %v1006_v23, %v1018_v55  ;;  %v1072_v59 = vcombine.high %v1006_v23, %v1018_v55  ;;  %v1207_v61 = vcombine.low %v1009_v24, %v1021_v56  ;;  %v1208_v62 = vcombine.high %v1009_v24, %v1021_v56 }
 0x227   : > { %v1223_v24 = vcombine.low %v1167_v48, %v1183_v52 }
 0x228   : > { %v1079_v4 = vrot.slane %v1071_v57, %v6010_v12  ;;  %v1086_v5 = vrot.slane %v1072_v59, %v6010_v12  ;;  %v1215_v6 = vrot.slane %v1207_v61, %v6010_v12  ;;  %v1222_v7 = vrot.slane %v1208_v62, %v6010_v12 }
 0x229   : > { %v6054_v13 = vpop.permute.xlu1 %634  ;;  %v6056_v14 = vpop.permute.xlu0 %631  ;;  %v1231_v46 = vrot.slane %v1223_v24, %v6018_v22 }
 0x22a   : > { %v1119_v16 = vcombine.low %v1063_v2, %v1079_v4  ;;  %v1120_v17 = vcombine.high %v1063_v2, %v1079_v4  ;;  %v1135_v18 = vcombine.low %v1070_v3, %v1086_v5  ;;  %v1136_v19 = vcombine.high %v1070_v3, %v1086_v5 }
 0x22b   : > { %v1255_v20 = vcombine.low %v1199_v10, %v1215_v6  ;;  %v1256_v21 = vcombine.high %v1199_v10, %v1215_v6  ;;  %v1271_v23 = vcombine.low %v1206_v11, %v1222_v7  ;;  %v1272_v44 = vcombine.high %v1206_v11, %v1222_v7 }
 0x22c   : > { %v1127_v27 = vrot.slane %v1119_v16, %v6018_v22  ;;  %v1134_v31 = vrot.slane %v1120_v17, %v6018_v22  ;;  %v1143_v32 = vrot.slane %v1135_v18, %v6018_v22  ;;  %v1150_v43 = vrot.slane %v1136_v19, %v6018_v22 }
 0x22d   : > { %v6064_v33 = vpop.permute.xlu1 %640  ;;  %v6066_v34 = vpop.permute.xlu0 %637  ;;  %v1263_v37 = vrot.slane %v1255_v20, %v6018_v22  ;;  %v1270_v38 = vrot.slane %v1256_v21, %v6018_v22  ;;  %v1279_v45 = vrot.slane %v1271_v23, %v6018_v22  ;;  %v1286_v2 = vrot.slane %v1272_v44, %v6018_v22 }
 0x22e   : > { %v1151_v48 = vcombine.low %v1095_v28, %v1127_v27  ;;  %v1152_v49 = vcombine.high %v1095_v28, %v1127_v27  ;;  %v1153_v52 = vcombine.low %v1102_v35, %v1134_v31  ;;  %v1154_v53 = vcombine.high %v1102_v35, %v1134_v31 }
 0x22f   : > { %v1155_v54 = vcombine.low %v1111_v36, %v1143_v32  ;;  %v1287_v57 = vcombine.low %v1231_v46, %v1263_v37  ;;  %v1288_v59 = vcombine.high %v1231_v46, %v1263_v37  ;;  %v1289_v61 = vcombine.low %v1238_v47, %v1270_v38 }
 0x230   : > { %v1290_v62 = vcombine.high %v1238_v47, %v1270_v38  ;;  %v1156_v63 = vcombine.high %v1111_v36, %v1143_v32  ;;  %v1157_v0 = vcombine.low %v1118_v42, %v1150_v43  ;;  %v1291_v3 = vcombine.low %v1247_v50, %v1279_v45 }
 0x231   : > { %v647_v55 = vpop.permute.xlu1 %646  ;;  %v644_v56 = vpop.permute.xlu0 %643  ;;  %v1254_v4 = vrot.slane %v1240_v29, %v6018_v22  ;;  %v6080_v5 = vcombine.high %v1118_v42, %v1150_v43  ;;  %v1299_v6 = vshrl.u32 %v1151_v48, 16  ;;  %v1307_v7 = vshrl.u32 %v1152_v49, 16 }
 0x232   : > { %v1315_v8 = vshrl.u32 %v1153_v52, 16  ;;  %v1323_v9 = vshrl.u32 %v1154_v53, 16  ;;  %v1292_v10 = vcombine.high %v1247_v50, %v1279_v45  ;;  %v1300_v11 = vshrl.u32 %v1287_v57, 16 }
 0x233   : > { %v1331_v16 = vshrl.u32 %v1155_v54, 16  ;;  %v1308_v17 = vshrl.u32 %v1288_v59, 16  ;;  %v1316_v18 = vshrl.u32 %v1289_v61, 16  ;;  %v1324_v19 = vshrl.u32 %v1290_v62, 16 }
 0x234   : > { %v1339_v20 = vshrl.u32 %v1156_v63, 16  ;;  %v1347_v21 = vshrl.u32 %v1157_v0, 16  ;;  %v1293_v23 = vcombine.low %v1254_v4, %v1286_v2  ;;  %v1332_v24 = vshrl.u32 %v1291_v3, 16 }
 0x235   : > { %v6082_v15 = vpop.permute.xlu1 %1683  ;;  %v6084_v25 = vpop.permute.xlu0 %1680  ;;  %v1355_v26 = vshrl.u32 %v6080_v5, 16  ;;  %v6087_v27 = vcombine.high %v1254_v4, %v1286_v2  ;;  %v6089_v28 = vpack.i.b16 %v1287_v57, %v1151_v48  ;;  %v6091_v29 = vpack.i.b16 %v1288_v59, %v1152_v49 }
 0x236   : > { %v6093_v31 = vpack.i.b16 %v1300_v11, %v1299_v6  ;;  %v6095_v32 = vpack.i.b16 %v1289_v61, %v1153_v52  ;;  %v6097_v35 = vpack.i.b16 %v1290_v62, %v1154_v53  ;;  %v1340_v36 = vshrl.u32 %v1292_v10, 16 }
 0x237   : > { %v6101_v38 = vpack.i.b16 %v1308_v17, %v1307_v7  ;;  %v6103_v42 = vpack.i.b16 %v1316_v18, %v1315_v8  ;;  %v6105_v43 = vpack.i.b16 %v1324_v19, %v1323_v9  ;;  %v6107_v44 = vpack.i.b16 %v1291_v3, %v1155_v54 }
 0x238   : > { %7190 = vst [vmem:[#allocation19_spill] sm:$0xff] %v6093_v31  ;;  %v6109_v45 = vpack.i.b16 %v1332_v24, %v1331_v16  ;;  %v6111_v46 = vpack.i.b16 %v1292_v10, %v1156_v63  ;;  %v6113_v47 = vpack.i.b16 %v1293_v23, %v1157_v0  ;;  %v1348_v48 = vshrl.u32 %v1293_v23, 16 }
 0x239   : > { %v6099_v37 = vpop.permute.xlu1 %1689  ;;  %7191 = vst [vmem:[#allocation20_spill] sm:$0xff] %v6101_v38  ;;  %7192 = vst [vmem:[#allocation21_spill] sm:$0xff] %v6103_v42  ;;  %v733_v49 = vcombine.low %v6005_v60, %v6064_v33  ;;  %v665_v50 = vcombine.low %v6003_v58, %v6066_v34  ;;  %v741_v52 = vcombine.low %v6054_v13, %v647_v55  ;;  %v1356_v59 = vshrl.u32 %v6087_v27, 16  ;;  %v6130_v62 = vpop.permute.xlu0 %1686 }
 0x23a   : > { %7193 = vst [vmem:[#allocation22_spill] sm:$0xff] %v6105_v43  ;;  %7194 = vst [vmem:[#allocation23_spill] sm:$0xff] %v6109_v45  ;;  %v673_v53 = vcombine.low %v6056_v14, %v644_v56  ;;  %v6121_v57 = vpack.i.b16 %v1340_v36, %v1339_v20  ;;  %v6125_v54 = vpack.i.b16 %v6087_v27, %v6080_v5 }
 0x23b   : > { %v1359_v61 = vcombine.low %v6089_v28, %v6095_v32  ;;  %v740_v58 = vrot.slane %v733_v49, %v6010_v12  ;;  %v672_v13 = vrot.slane %v665_v50, %v6010_v12  ;;  %v748_v14 = vrot.slane %v741_v52, %v6010_v12 }
 0x23c   : > { %7195 = vst [vmem:[#allocation24_spill] sm:$0xff] %v6121_v57  ;;  %v680_v33 = vrot.slane %v673_v53, %v6010_v12  ;;  %v6136_v34 = vpack.i.b16 %v1348_v48, %v1347_v21  ;;  %v1725_v56 = vcombine.low %v5919_v51, %v6099_v37  ;;  %v1375_v6 = vcombine.low %v6091_v29, %v6097_v35 }
 0x23d   : > { %v1696_v60 = vpop.permute.xlu1 %1695  ;;  %v765_v0 = vcombine.low %v740_v58, %v748_v14  ;;  %v766_v2 = vcombine.high %v740_v58, %v748_v14  ;;  %v1391_v8 = vcombine.low %v6107_v44, %v6113_v47  ;;  %v1407_v9 = vcombine.low %v6111_v46, %v6125_v54  ;;  %v6160_v23 = vpop.permute.xlu0 %1692 }
 0x23e   : > { %7196 = vst [vmem:[#allocation25_spill] sm:$0xff] %v6136_v34  ;;  %v1741_v63 = vcombine.low %v6082_v15, %v1696_v60  ;;  %v697_v3 = vcombine.low %v672_v13, %v680_v33  ;;  %v698_v4 = vcombine.high %v672_v13, %v680_v33  ;;  %v1726_v18 = vcombine.high %v5919_v51, %v6099_v37 }
 0x23f   : > { %v773_v10 = vrot.slane %v765_v0, %v6018_v22  ;;  %v780_v11 = vrot.slane %v766_v2, %v6018_v22  ;;  %v1733_v19 = vrot.slane %v1725_v56, %v6010_v12  ;;  %v1742_v20 = vcombine.high %v6082_v15, %v1696_v60 }
 0x240   : > { %v705_v16 = vrot.slane %v697_v3, %v6018_v22  ;;  %v712_v17 = vrot.slane %v698_v4, %v6018_v22  ;;  %v1749_v21 = vrot.slane %v1741_v63, %v6010_v12  ;;  %v6173_v4 = vrot.slane %v1359_v61, %v6010_v12 }
 0x241   : > { %v781_v24 = vcombine.low %v6030_v40, %v773_v10  ;;  %v782_v36 = vcombine.high %v6030_v40, %v773_v10  ;;  %v783_v48 = vcombine.low %v6033_v41, %v780_v11  ;;  %v784_v49 = vcombine.high %v6033_v41, %v780_v11  ;;  %v6170_v56 = vpop.permute.xlu1 %1701  ;;  %v1699_v10 = vpop.permute.xlu0 %1698 }
 0x242   : > { %v713_v50 = vcombine.low %v6024_v30, %v705_v16  ;;  %v714_v51 = vcombine.high %v6024_v30, %v705_v16  ;;  %v715_v37 = vcombine.low %v6027_v39, %v712_v17  ;;  %v716_v15 = vcombine.high %v6027_v39, %v712_v17 }
 0x243   : > { %v789_v52 = vshrl.u32 %v781_v24, 16  ;;  %v795_v53 = vshrl.u32 %v782_v36, 16  ;;  %v801_v60 = vshrl.u32 %v783_v48, 16  ;;  %v807_v58 = vshrl.u32 %v784_v49, 16 }
 0x244   : > { %v787_v13 = vpack.i.b16 %v781_v24, %v713_v50  ;;  %v788_v14 = vshrl.u32 %v713_v50, 16  ;;  %v793_v33 = vpack.i.b16 %v782_v36, %v714_v51  ;;  %v794_v40 = vshrl.u32 %v714_v51, 16 }
 0x245   : > { %v799_v63 = vpack.i.b16 %v783_v48, %v715_v37  ;;  %v800_v41 = vshrl.u32 %v715_v37, 16  ;;  %v805_v0 = vpack.i.b16 %v784_v49, %v716_v15  ;;  %v806_v2 = vshrl.u32 %v716_v15, 16 }
 0x246   : > { %v790_v3 = vpack.i.b16 %v789_v52, %v788_v14  ;;  %v796_v30 = vpack.i.b16 %v795_v53, %v794_v40  ;;  %v6176_v39 = vrot.slane %v1375_v6, %v6010_v12  ;;  %v1756_v17 = vrot.slane %v1742_v20, %v6010_v12 }
 0x247   : > { %v802_v11 = vpack.i.b16 %v801_v60, %v800_v41  ;;  %v808_v16 = vpack.i.b16 %v807_v58, %v806_v2  ;;  %v1789_v24 = vcombine.low %v1733_v19, %v1749_v21  ;;  %v813_v36 = vshrl.u32 %v787_v13, 16  ;;  %v6184_v60 = vpop.permute.xlu1 %1707 }
 0x248   : > { %v814_v50 = vshrl.u32 %v790_v3, 16  ;;  %v821_v48 = vshrl.u32 %v793_v33, 16  ;;  %v822_v51 = vshrl.u32 %v796_v30, 16  ;;  %v829_v49 = vshrl.u32 %v799_v63, 16 }
 0x249   : > { %v830_v37 = vshrl.u32 %v802_v11, 16  ;;  %v837_v15 = vshrl.u32 %v805_v0, 16  ;;  %v838_v52 = vshrl.u32 %v808_v16, 16  ;;  %v6179_v53 = vpack.i.b16 %v790_v3, %v787_v13 }
 0x24a   : > { %v6181_v61 = vpack.i.b16 %v802_v11, %v799_v63  ;;  %v1740_v6 = vrot.slane %v1726_v18, %v6010_v12  ;;  %v1790_v14 = vcombine.high %v1733_v19, %v1749_v21  ;;  %v6186_v58 = vpack.i.b16 %v814_v50, %v813_v36  ;;  %v6204_v21 = vpop.permute.xlu0 %1704 }
 0x24b   : > { %v6188_v20 = vpack.i.b16 %v822_v51, %v821_v48  ;;  %v6190_v40 = vpack.i.b16 %v830_v37, %v829_v49  ;;  %v6192_v41 = vpack.i.b16 %v838_v52, %v837_v15  ;;  %v6198_v13 = vpack.i.b16 %v1356_v59, %v1355_v26 }
 0x24c   : > { %v1805_v63 = vcombine.low %v1740_v6, %v1756_v17  ;;  %v1861_v18 = vcombine.low %v6084_v25, %v6160_v23  ;;  %v1862_v19 = vcombine.high %v6084_v25, %v6160_v23  ;;  %v6206_v2 = vpack.i.b16 %v796_v30, %v793_v33 }
 0x24d   : > { %7197 = vst [vmem:[#allocation26_spill] sm:$0xff] %v6198_v13  ;;  %v6208_v3 = vpack.i.b16 %v808_v16, %v805_v0  ;;  %v6211_v11 = vrot.slane %v1789_v24, %v6018_v22  ;;  %v1806_v5 = vcombine.high %v1740_v6, %v1756_v17  ;;  %v841_v26 = vcombine.low %v6179_v53, %v6181_v61  ;;  %v1714_v24 = vpop.permute.xlu1 %1713 }
 0x24e   : > { %v6216_v27 = vrot.slane %v1790_v14, %v6018_v22  ;;  %v6222_v25 = vrot.slane %v1391_v8, %v6010_v12  ;;  %v6228_v59 = vrot.slane %v1407_v9, %v6010_v12  ;;  %v909_v23 = vcombine.low %v6186_v58, %v6190_v40  ;;  %v6262_v6 = vpop.permute.xlu0 %1710 }
 0x24f   : > { %v925_v33 = vcombine.low %v6188_v20, %v6192_v41  ;;  %v1423_v0 = vcombine.low %v6173_v4, %v6176_v39  ;;  %v1495_v30 = vcombine.low %v6093_v31, %v6103_v42  ;;  %v1511_v16 = vcombine.low %v6101_v38, %v6105_v43 }
 0x250   : > { %v1455_v8 = vcombine.low %v6222_v25, %v6228_v59  ;;  %v1527_v9 = vcombine.low %v6109_v45, %v6136_v34  ;;  %v1543_v17 = vcombine.low %v6121_v57, %v6198_v13  ;;  %v1877_v48 = vcombine.low %v6130_v62, %v1699_v10 }
 0x251   : > { %v1431_v36 = vrot.slane %v1423_v0, %v6018_v22  ;;  %v6248_v50 = vrot.slane %v1495_v30, %v6010_v12  ;;  %v1878_v51 = vcombine.high %v6130_v62, %v1699_v10  ;;  %v6254_v37 = vrot.slane %v1511_v16, %v6010_v12  ;;  %v1720_v57 = vpop.permute.xlu1 %1719 }
 0x252   : > { %v1463_v49 = vrot.slane %v1455_v8, %v6018_v22  ;;  %v6257_v15 = vrot.slane %v1527_v9, %v6010_v12  ;;  %v6260_v52 = vrot.slane %v1543_v17, %v6010_v12  ;;  %v857_v14 = vcombine.low %v6206_v2, %v6208_v3 }
 0x253   : > { %v6267_v0 = vrot.slane %v1805_v63, %v6018_v22  ;;  %v1885_v62 = vrot.slane %v1877_v48, %v6010_v12  ;;  %v6271_v10 = vrot.slane %v1878_v51, %v6010_v12  ;;  %v1869_v30 = vrot.slane %v1861_v18, %v6010_v12 }
 0x254   : > { %v1487_v8 = vcombine.low %v1431_v36, %v1463_v49  ;;  %v1559_v16 = vcombine.low %v6248_v50, %v6254_v37  ;;  %v1591_v9 = vcombine.low %v6257_v15, %v6260_v52  ;;  %v6279_v17 = vrot.slane %v909_v23, %v6010_v12 }
 0x255   : > { %v6282_v63 = vrot.slane %v925_v33, %v6010_v12  ;;  %v6285_v48 = vrot.slane %v1806_v5, %v6018_v22  ;;  %v1876_v51 = vrot.slane %v1862_v19, %v6010_v12  ;;  %v1925_v55 = vcombine.low %v1869_v30, %v1885_v62 }
 0x256   : > { %7198 = vst [vmem:[#allocation27_spill] sm:$0xff] %v6279_v17  ;;  %v1567_v18 = vrot.slane %v1559_v16, %v6018_v22  ;;  %v1599_v7 = vrot.slane %v1591_v9, %v6018_v22  ;;  %v1757_v1 = vcombine.low %v6170_v56, %v1714_v24  ;;  %v1926_v13 = vcombine.high %v1869_v30, %v1885_v62  ;;  %v6300_v9 = vpop.permute.xlu0 %1716 }
 0x257   : > { %v1941_v23 = vcombine.low %v1876_v51, %v6271_v10  ;;  %v1758_v45 = vcombine.high %v6170_v56, %v1714_v24  ;;  %v6294_v33 = vrot.slane %v841_v26, %v6010_v12  ;;  %v1942_v34 = vcombine.high %v1876_v51, %v6271_v10 }
 0x258   : > { %v1623_v5 = vcombine.low %v1567_v18, %v1599_v7  ;;  %v1634_v19 = vshrl.u32 %v1487_v8, 16  ;;  %v6298_v16 = vrot.slane %v857_v14, %v6010_v12  ;;  %v1488_v38 = vcombine.high %v1431_v36, %v1463_v49 }
 0x259   : > { %v1624_v43 = vcombine.high %v1567_v18, %v1599_v7  ;;  %v1773_v62 = vcombine.low %v6184_v60, %v1720_v57  ;;  %v1774_v30 = vcombine.high %v6184_v60, %v1720_v57  ;;  %v6305_v56 = vrot.slane %v1925_v55, %v6018_v22 }
 0x25a   : > { %v1633_v31 = vpack.i.b16 %v1623_v5, %v1487_v8  ;;  %v1635_v26 = vshrl.u32 %v1623_v5, 16  ;;  %v1765_v24 = vrot.slane %v1757_v1, %v6010_v12  ;;  %v6309_v10 = vrot.slane %v1926_v13, %v6018_v22 }
 0x25b   : > { %v1772_v14 = vrot.slane %v1758_v45, %v6010_v12  ;;  %v1641_v51 = vshrl.u32 %v1624_v43, 16  ;;  %v1781_v36 = vrot.slane %v1773_v62, %v6010_v12  ;;  %v873_v57 = vcombine.low %v6294_v33, %v6298_v16 }
 0x25c   : > { %v2409_v7 = vsel %vm2404_vm3, %v1633_v31, 0  ;;  %v1636_v49 = vpack.i.b16 %v1635_v26, %v1634_v19  ;;  %v1788_v55 = vrot.slane %v1774_v30, %v6010_v12  ;;  %v941_v1 = vcombine.low %v6279_v17, %v6282_v63  ;;  %v1723_v19 = vpop.permute.xlu0 %1722 }
 0x25d   : > { %4956 = vmatpush3.bf16.xpose.msra.mxu1 %v2409_v7  ;;  %v1640_v60 = vshrl.u32 %v1488_v38, 16  ;;  %v1821_v13 = vcombine.low %v1765_v24, %v1781_v36  ;;  %v1822_v8 = vcombine.high %v1765_v24, %v1781_v36  ;;  %v7199_v18 = vmov 0.0  }
 0x25e   : > { %v2455_v45 = vsel %vm2404_vm3, %v1636_v49, 0  ;;  %4967 = vmatprep.subr.bf16.mxu1 %v7199_v18  ;;  %v1639_v5 = vpack.i.b16 %v1624_v43, %v1488_v38  ;;  %v1837_v62 = vcombine.low %v1772_v14, %v1788_v55  ;;  %v1838_v31 = vcombine.high %v1772_v14, %v1788_v55 }
 0x25f   : > { %4962 = vmatpush3.bf16.xpose.msra.mxu0 %v2455_v45  ;;  %v1642_v26 = vpack.i.b16 %v1641_v51, %v1640_v60  ;;  %v1829_v42 = vrot.slane %v1821_v13, %v6018_v22  ;;  %v1836_v30 = vrot.slane %v1822_v8, %v6018_v22  ;;  %v1893_v7 = vcombine.low %v6204_v21, %v6300_v9 }
 0x260   : > { %v6326_v17 = vrot.slane %v1941_v23, %v6018_v22  ;;  %v881_v24 = vrot.slane %v873_v57, %v6018_v22  ;;  %4973 = vmatprep.subr.bf16.mxu0 %v7199_v18  ;;  %v1845_v38 = vrot.slane %v1837_v62, %v6018_v22  ;;  %v1852_v43 = vrot.slane %v1838_v31, %v6018_v22 }
 0x261   : > { %v6333_v14 = vcombine.low %v6211_v11, %v1829_v42  ;;  %v6336_v51 = vcombine.high %v6211_v11, %v1829_v42  ;;  %v6339_v36 = vcombine.low %v6216_v27, %v1836_v30  ;;  %v1909_v23 = vcombine.low %v6262_v6, %v1723_v19 }
 0x262   : > { %v1956_v49 = vrot.slane %v1942_v34, %v6018_v22  ;;  %v949_v57 = vrot.slane %v941_v1, %v6018_v22  ;;  %v6345_v55 = vcombine.high %v6216_v27, %v1836_v30  ;;  %v6348_v60 = vcombine.low %v6267_v0, %v1845_v38 }
 0x263   : > { %v2501_v13 = vsel %vm2404_vm3, %v1639_v5, 0  ;;  %v2547_v42 = vsel %vm2404_vm3, %v1642_v26, 0  ;;  %v1894_v11 = vcombine.high %v6204_v21, %v6300_v9  ;;  %v1901_v8 = vrot.slane %v1893_v7, %v6010_v12 }
 0x264   : > { %4958 = vmatmul.mubr.msk.bf16.vlgmr.msra.gmra.mrb[4].mxu1 %vm2404_vm3, %v881_v24  ;;  %v6357_v34 = vcombine.high %v6267_v0, %v1845_v38  ;;  %v6360_v27 = vcombine.low %v6285_v48, %v1852_v43  ;;  %v6363_v1 = vcombine.high %v6285_v48, %v1852_v43  ;;  %v2001_v45 = vshrl.u32 %v6333_v14, 16 }
 0x265   : > { %4968 = vmatpush3.bf16.xpose.msra.mxu1 %v2501_v13  ;;  %v2009_v5 = vshrl.u32 %v6336_v51, 16  ;;  %v2017_v21 = vshrl.u32 %v6339_v36, 16  ;;  %4969 = vmatprep.mubr.msk.bf16.mxu1 %vm5563_vm0, %v7199_v18  ;;  %v1910_v9 = vcombine.high %v6262_v6, %v1723_v19  ;;  %v1917_v0 = vrot.slane %v1909_v23, %v6010_v12 }
 0x266   : > { %4964 = vmatmul.mubr.msk.bf16.vlgmr.msra.gmra.mrb[4].mxu0 %vm2404_vm3, %v949_v57  ;;  %v2025_v62 = vshrl.u32 %v6345_v55, 16  ;;  %v2033_v48 = vshrl.u32 %v6348_v60, 16  ;;  %4979 = vmatprep.subr.bf16.mxu1 %v7199_v18  ;;  %v1424_v31 = vcombine.high %v6173_v4, %v6176_v39  ;;  %v1456_v26 = vcombine.high %v6222_v25, %v6228_v59 }
 0x267   : > { %4974 = vmatpush3.bf16.xpose.msra.mxu0 %v2547_v42  ;;  %v1908_v30 = vrot.slane %v1894_v11, %v6010_v12  ;;  %v1924_v6 = vrot.slane %v1910_v9, %v6010_v12  ;;  %v1957_v19 = vcombine.low %v1901_v8, %v1917_v0  ;;  %v1958_v7 = vcombine.high %v1901_v8, %v1917_v0 }
 0x268   : > { %v2041_v38 = vshrl.u32 %v6357_v34, 16  ;;  %v2049_v43 = vshrl.u32 %v6360_v27, 16  ;;  %v1560_v23 = vcombine.high %v6248_v50, %v6254_v37  ;;  %v1592_v4 = vcombine.high %v6257_v15, %v6260_v52  ;;  %4975 = vmatprep.mubr.msk.bf16.mxu0 %vm5563_vm0, %v7199_v18  ;;  %4985 = vmatprep.subr.bf16.mxu0 %v7199_v18 }
 0x269   : > { %v1965_v39 = vrot.slane %v1957_v19, %v6018_v22  ;;  %v1972_v25 = vrot.slane %v1958_v7, %v6018_v22  ;;  %v1973_v59 = vcombine.low %v1908_v30, %v1924_v6  ;;  %v1974_v13 = vcombine.high %v1908_v30, %v1924_v6 }
 0x26a   : > { %v2057_v42 = vshrl.u32 %v6363_v1, 16  ;;  %v5582_v11 = vmov 0   ;;  %v1438_v50 = vrot.slane %v1424_v31, %v6018_v22  ;;  %v1470_v37 = vrot.slane %v1456_v26, %v6018_v22 }
 0x26b   : > { %v905_v8 = vcombine.high %v881_v24, %v5582_v11  ;;  %v1981_v15 = vrot.slane %v1973_v59, %v6018_v22  ;;  %v1988_v52 = vrot.slane %v1974_v13, %v6018_v22  ;;  %v1989_v9 = vcombine.low %v6305_v56, %v1965_v39 }
 0x26c   : > { %v1990_v0 = vcombine.high %v6305_v56, %v1965_v39  ;;  %v1991_v19 = vcombine.low %v6309_v10, %v1972_v25  ;;  %v1992_v30 = vcombine.high %v6309_v10, %v1972_v25  ;;  %v1574_v24 = vrot.slane %v1560_v23, %v6018_v22 }
 0x26d   : > { %4970 = vmatmul.mubr.msk.bf16.vlgmr.msra.gmra.mrb[8].mxu1 %vm2404_vm3, %v905_v8  ;;  %v973_v31 = vcombine.high %v949_v57, %v5582_v11  ;;  %v1993_v26 = vcombine.low %v6326_v17, %v1981_v15  ;;  %v1994_v6 = vcombine.high %v6326_v17, %v1981_v15  ;;  %v1995_v7 = vcombine.low %v1956_v49, %v1988_v52 }
 0x26e   : > { %v1606_v59 = vrot.slane %v1592_v4, %v6018_v22  ;;  %4981 = vmatprep.mubr.msk.bf16.mxu1 %vm5563_vm0, %v7199_v18  ;;  %v1996_v56 = vcombine.high %v1956_v49, %v1988_v52  ;;  %v6412_v39 = vpack.i.b16 %v1989_v9, %v6333_v14  ;;  %v2002_v10 = vshrl.u32 %v1989_v9, 16 }
 0x26f   : > { %v2010_v25 = vshrl.u32 %v1990_v0, 16  ;;  %4976 = vmatmul.mubr.msk.bf16.vlgmr.msra.gmra.mrb[8].mxu0 %vm2404_vm3, %v973_v31  ;;  %v6416_v57 = vpack.i.b16 %v1990_v0, %v6336_v51  ;;  %v6419_v23 = vpack.i.b16 %v1991_v19, %v6339_v36  ;;  %v2018_v17 = vshrl.u32 %v1991_v19, 16 }
 0x270   : > { %v2026_v13 = vshrl.u32 %v1992_v30, 16  ;;  %4987 = vmatprep.mubr.msk.bf16.mxu0 %vm5563_vm0, %v7199_v18  ;;  %v6423_v4 = vpack.i.b16 %v2002_v10, %v2001_v45  ;;  %v6428_v14 = vpack.i.b16 %v1992_v30, %v6345_v55  ;;  %v2034_v8 = vshrl.u32 %v1993_v26, 16 }
 0x271   : > { %v6425_v49 = vpack.i.b16 %v2010_v25, %v2009_v5  ;;  %v6430_v15 = vpack.i.b16 %v2018_v17, %v2017_v21  ;;  %v6433_v51 = vpack.i.b16 %v1993_v26, %v6348_v60  ;;  %v6436_v36 = vpack.i.b16 %v1994_v6, %v6357_v34 }
 0x272   : > { %v2042_v52 = vshrl.u32 %v1994_v6, 16  ;;  %v6438_v9 = vpack.i.b16 %v2026_v13, %v2025_v62  ;;  %v6441_v45 = vpack.i.b16 %v1995_v7, %v6360_v27  ;;  %v2050_v5 = vshrl.u32 %v1995_v7, 16 }
 0x273   : > { %v6444_v0 = vpack.i.b16 %v1996_v56, %v6363_v1  ;;  %v6446_v55 = vpack.i.b16 %v2034_v8, %v2033_v48  ;;  %v2058_v19 = vshrl.u32 %v1996_v56, 16  ;;  %v2062_v60 = vcombine.high %v6412_v39, %v6419_v23 }
 0x274   : > { %v6448_v21 = vpack.i.b16 %v2042_v52, %v2041_v38  ;;  %v6452_v34 = vpack.i.b16 %v2050_v5, %v2049_v43  ;;  %v2078_v62 = vcombine.high %v6416_v57, %v6428_v14  ;;  %v1489_v30 = vcombine.low %v1438_v50, %v1470_v37  ;;  %v7203_v52 = vld [vmem:[#allocation21_spill] sm:$0xff]  ;;  %v7204_v5 = vld [vmem:[#allocation19_spill] sm:$0xff] }
 0x275   : > { %v1625_v27 = vcombine.low %v1574_v24, %v1606_v59  ;;  %v1392_v31 = vcombine.high %v6107_v44, %v6113_v47  ;;  %v6458_v1 = vpack.i.b16 %v2058_v19, %v2057_v42  ;;  %v2094_v48 = vcombine.high %v6433_v51, %v6441_v45 }
 0x276   : > { %v2110_v38 = vcombine.high %v6436_v36, %v6444_v0  ;;  %v1408_v43 = vcombine.high %v6111_v46, %v6125_v54  ;;  %v842_v26 = vcombine.high %v6179_v53, %v6181_v61  ;;  %v2198_v6 = vcombine.high %v6423_v4, %v6430_v15 }
 0x277   : > { %v858_v47 = vcombine.high %v6206_v2, %v6208_v3  ;;  %v910_v42 = vcombine.high %v6186_v58, %v6190_v40  ;;  %v1645_v54 = vpack.i.b16 %v1625_v27, %v1489_v30  ;;  %v1646_v53 = vshrl.u32 %v1489_v30, 16  ;;  %v7205_v30 = vld [vmem:[#allocation22_spill] sm:$0xff] }
 0x278   : > { %v1647_v61 = vshrl.u32 %v1625_v27, 16  ;;  %v874_v56 = vcombine.high %v6294_v33, %v6298_v16  ;;  %v1490_v10 = vcombine.high %v1438_v50, %v1470_v37  ;;  %v1626_v25 = vcombine.high %v1574_v24, %v1606_v59  ;;  %v7206_v27 = vld [vmem:[#allocation20_spill] sm:$0xff] }
 0x279   : > { %v7200_v2 = vcombine.high %v6089_v28, %v6095_v32  ;;  %v7201_v58 = vcombine.high %v6091_v29, %v6097_v35  ;;  %v926_v17 = vcombine.high %v6188_v20, %v6192_v41  ;;  %v2061_v33 = vcombine.low %v6412_v39, %v6419_v23  ;;  %v7202_v20 = vld [vmem:[#allocation27_spill] sm:$0xff] }
 0x27a   : > { %v2593_v16 = vsel %vm2404_vm3, %v1645_v54, 0  ;;  %v1648_v50 = vpack.i.b16 %v1647_v61, %v1646_v53  ;;  %v2077_v28 = vcombine.low %v6416_v57, %v6428_v14  ;;  %v2093_v32 = vcombine.low %v6433_v51, %v6441_v45  ;;  %v7208_v61 = vld [vmem:[#allocation23_spill] sm:$0xff] }
 0x27b   : > { %v6486_v3 = vrot.slane %v7200_v2, %v6010_v12  ;;  %v6492_v40 = vrot.slane %v7201_v58, %v6010_v12  ;;  %4980 = vmatpush3.bf16.xpose.msra.mxu1 %v2593_v16  ;;  %v1653_v37 = vshrl.u32 %v1626_v25, 16  ;;  %v1406_v29 = vrot.slane %v1392_v31, %v6010_v12  ;;  %v7209_v2 = vld [vmem:[#allocation26_spill] sm:$0xff]  ;;  %v7210_v58 = vld [vmem:[#allocation24_spill] sm:$0xff] }
 0x27c   : > { %v2639_v35 = vsel %vm2404_vm3, %v1648_v50, 0  ;;  %4991 = vmatprep.subr.bf16.mxu1 %v7199_v18  ;;  %v942_v41 = vcombine.high %v7202_v20, %v6282_v63  ;;  %v1422_v24 = vrot.slane %v1408_v43, %v6010_v12  ;;  %v888_v13 = vrot.slane %v874_v56, %v6018_v22  ;;  %v7207_v63 = vld [vmem:[#allocation25_spill] sm:$0xff] }
 0x27d   : > { %v1439_v59 = vcombine.low %v6486_v3, %v6492_v40  ;;  %4986 = vmatpush3.bf16.xpose.msra.mxu0 %v2639_v35  ;;  %v1652_v8 = vshrl.u32 %v1490_v10, 16  ;;  %v1496_v19 = vcombine.high %v7204_v5, %v7203_v52  ;;  %v1512_v31 = vcombine.high %v7206_v27, %v7205_v30 }
 0x27e   : > { %v1651_v54 = vpack.i.b16 %v1626_v25, %v1490_v10  ;;  %4997 = vmatprep.subr.bf16.mxu0 %v7199_v18  ;;  %v1471_v53 = vcombine.low %v1406_v29, %v1422_v24  ;;  %v1528_v43 = vcombine.high %v7208_v61, %v7207_v63  ;;  %v1544_v16 = vcombine.high %v7210_v58, %v7209_v2 }
 0x27f   : > { %v1654_v50 = vpack.i.b16 %v1653_v37, %v1652_v8  ;;  %v1447_v56 = vrot.slane %v1439_v59, %v6018_v22  ;;  %v1510_v35 = vrot.slane %v1496_v19, %v6010_v12  ;;  %v1526_v20 = vrot.slane %v1512_v31, %v6010_v12 }
 0x280   : > { %v1479_v52 = vrot.slane %v1471_v53, %v6018_v22  ;;  %v1542_v10 = vrot.slane %v1528_v43, %v6010_v12  ;;  %v1558_v25 = vrot.slane %v1544_v16, %v6010_v12  ;;  %v856_v5 = vrot.slane %v842_v26, %v6010_v12 }
 0x281   : > { %v1575_v30 = vcombine.low %v1510_v35, %v1526_v20  ;;  %v872_v27 = vrot.slane %v858_v47, %v6010_v12  ;;  %v6530_v63 = vrot.slane %v910_v42, %v6010_v12  ;;  %v6533_v37 = vrot.slane %v926_v17, %v6010_v12 }
 0x282   : > { %v2109_v59 = vcombine.low %v6436_v36, %v6444_v0  ;;  %4982 = vmatmul.mubr.msk.bf16.vlgmr.msra.gmra.mrb[12].mxu1 %vm2404_vm3, %v888_v13  ;;  %v2685_v8 = vsel %vm2404_vm3, %v1651_v54, 0  ;;  %v956_v19 = vrot.slane %v942_v41, %v6018_v22  ;;  %v1607_v31 = vcombine.low %v1542_v10, %v1558_v25 }
 0x283   : > { %4992 = vmatpush3.bf16.xpose.msra.mxu1 %v2685_v8  ;;  %4993 = vmatprep.mubr.msk.bf16.mxu1 %vm5563_vm0, %v7199_v18  ;;  %v1491_v26 = vcombine.low %v1447_v56, %v1479_v52  ;;  %v1583_v47 = vrot.slane %v1575_v30, %v6018_v22  ;;  %v1440_v42 = vcombine.high %v6486_v3, %v6492_v40  ;;  %v2731_v54 = vsel %vm2404_vm3, %v1654_v50, 0 }
 0x284   : > { %v2197_v17 = vcombine.low %v6423_v4, %v6430_v15  ;;  %4988 = vmatmul.mubr.msk.bf16.vlgmr.msra.gmra.mrb[12].mxu0 %vm2404_vm3, %v956_v19  ;;  %5003 = vmatprep.subr.bf16.mxu1 %v7199_v18  ;;  %v1615_v41 = vrot.slane %v1607_v31, %v6018_v22  ;;  %v889_v53 = vcombine.low %v856_v5, %v872_v27 }
 0x285   : > { %4998 = vmatpush3.bf16.xpose.msra.mxu0 %v2731_v54  ;;  %v906_v61 = vcombine.high %v888_v13, %v5582_v11  ;;  %4999 = vmatprep.mubr.msk.bf16.mxu0 %vm5563_vm0, %v7199_v18  ;;  %v957_v3 = vcombine.low %v6530_v63, %v6533_v37  ;;  %v1472_v40 = vcombine.high %v1406_v29, %v1422_v24  ;;  %v1658_v50 = vshrl.u32 %v1491_v26, 16 }
 0x286   : > { %v1627_v43 = vcombine.low %v1583_v47, %v1615_v41  ;;  %5009 = vmatprep.subr.bf16.mxu0 %v7199_v18  ;;  %v1628_v2 = vcombine.high %v1583_v47, %v1615_v41  ;;  %v1576_v58 = vcombine.high %v1510_v35, %v1526_v20  ;;  %v1608_v16 = vcombine.high %v1542_v10, %v1558_v25 }
 0x287   : > { %v1492_v30 = vcombine.high %v1447_v56, %v1479_v52  ;;  %v1454_v8 = vrot.slane %v1440_v42, %v6018_v22  ;;  %v1486_v31 = vrot.slane %v1472_v40, %v6018_v22  ;;  %v897_v46 = vrot.slane %v889_v53, %v6018_v22 }
 0x288   : > { %v1657_v13 = vpack.i.b16 %v1627_v43, %v1491_v26  ;;  %v1659_v54 = vshrl.u32 %v1627_v43, 16  ;;  %v890_v7 = vcombine.high %v856_v5, %v872_v27  ;;  %v965_v29 = vrot.slane %v957_v3, %v6018_v22 }
 0x289   : > { %v1663_v44 = vpack.i.b16 %v1628_v2, %v1492_v30  ;;  %v1590_v24 = vrot.slane %v1576_v58, %v6018_v22  ;;  %v1622_v47 = vrot.slane %v1608_v16, %v6018_v22  ;;  %v974_v35 = vcombine.high %v956_v19, %v5582_v11 }
 0x28a   : > { %4994 = vmatmul.mubr.msk.bf16.vlgmr.msra.gmra.mrb[16].mxu1 %vm2404_vm3, %v906_v61  ;;  %v2777_v56 = vsel %vm2404_vm3, %v1657_v13, 0  ;;  %v1660_v20 = vpack.i.b16 %v1659_v54, %v1658_v50  ;;  %v1665_v52 = vshrl.u32 %v1628_v2, 16  ;;  %v2213_v10 = vcombine.low %v6425_v49, %v6438_v9 }
 0x28b   : > { %v2229_v25 = vcombine.low %v6446_v55, %v6452_v34  ;;  %5004 = vmatpush3.bf16.xpose.msra.mxu1 %v2777_v56  ;;  %5005 = vmatprep.mubr.msk.bf16.mxu1 %vm5563_vm0, %v7199_v18  ;;  %v1493_v5 = vcombine.low %v1454_v8, %v1486_v31  ;;  %v2245_v27 = vcombine.low %v6448_v21, %v6458_v1  ;;  %v1664_v26 = vshrl.u32 %v1492_v30, 16 }
 0x28c   : > { %5000 = vmatmul.mubr.msk.bf16.vlgmr.msra.gmra.mrb[16].mxu0 %vm2404_vm3, %v974_v35  ;;  %v2823_v19 = vsel %vm2404_vm3, %v1660_v20, 0  ;;  %5015 = vmatprep.subr.bf16.mxu1 %v7199_v18  ;;  %v6578_v42 = vrot.slane %v890_v7, %v6018_v22  ;;  %v2869_v41 = vsel %vm2404_vm3, %v1663_v44, 0  ;;  %v907_v53 = vcombine.high %v897_v46, %v5582_v11 }
 0x28d   : > { %5010 = vmatpush3.bf16.xpose.msra.mxu0 %v2823_v19  ;;  %5011 = vmatprep.mubr.msk.bf16.mxu0 %vm5563_vm0, %v7199_v18  ;;  %v1629_v61 = vcombine.low %v1590_v24, %v1622_v47  ;;  %v6585_v3 = vcombine.high %v965_v29, %v5582_v11  ;;  %v1666_v40 = vpack.i.b16 %v1665_v52, %v1664_v26  ;;  %v1670_v2 = vshrl.u32 %v1493_v5, 16 }
 0x28e   : > { %5021 = vmatprep.subr.bf16.mxu0 %v7199_v18  ;;  %v1630_v43 = vcombine.high %v1590_v24, %v1622_v47  ;;  %v2069_v7 = vrot.slane %v2061_v33, %v6010_v12  ;;  %v2085_v44 = vrot.slane %v2077_v28, %v6010_v12  ;;  %v1494_v58 = vcombine.high %v1454_v8, %v1486_v31 }
 0x28f   : > { %v958_v16 = vcombine.high %v6530_v63, %v6533_v37  ;;  %v2101_v50 = vrot.slane %v2093_v32, %v6010_v12  ;;  %v6604_v30 = vcombine.high %v6578_v42, %v5582_v11  ;;  %v2117_v33 = vrot.slane %v2109_v59, %v6010_v12 }
 0x290   : > { %v2125_v28 = vcombine.low %v2069_v7, %v2085_v44  ;;  %v2205_v8 = vrot.slane %v2197_v17, %v6010_v12  ;;  %v1669_v31 = vpack.i.b16 %v1629_v61, %v1493_v5  ;;  %v2221_v63 = vrot.slane %v2213_v10, %v6010_v12 }
 0x291   : > { %v2237_v37 = vrot.slane %v2229_v25, %v6010_v12  ;;  %v2253_v13 = vrot.slane %v2245_v27, %v6010_v12  ;;  %v1671_v32 = vshrl.u32 %v1629_v61, 16  ;;  %v1675_v54 = vpack.i.b16 %v1630_v43, %v1494_v58 }
 0x292   : > { %5006 = vmatmul.mubr.msk.bf16.vlgmr.msra.gmra.mrb[20].mxu1 %vm2404_vm3, %v897_v46  ;;  %v2133_v24 = vrot.slane %v2125_v28, %v6018_v22  ;;  %v2157_v47 = vcombine.low %v2101_v50, %v2117_v33  ;;  %v1677_v59 = vshrl.u32 %v1630_v43, 16  ;;  %v2261_v17 = vcombine.low %v2205_v8, %v2221_v63 }
 0x293   : > { %5016 = vmatpush3.bf16.xpose.msra.mxu1 %v2869_v41  ;;  %5017 = vmatprep.mubr.msk.bf16.mxu1 %vm5563_vm0, %v7199_v18  ;;  %v2293_v56 = vcombine.low %v2237_v37, %v2253_v13  ;;  %v2126_v35 = vcombine.high %v2069_v7, %v2085_v44  ;;  %v2915_v20 = vsel %vm2404_vm3, %v1666_v40, 0  ;;  %v2158_v52 = vcombine.high %v2101_v50, %v2117_v33 }
 0x294   : > { %5012 = vmatmul.mubr.msk.bf16.vlgmr.msra.gmra.mrb[20].mxu0 %vm2404_vm3, %v965_v29  ;;  %5027 = vmatprep.subr.bf16.mxu1 %v7199_v18  ;;  %v2165_v46 = vrot.slane %v2157_v47, %v6018_v22  ;;  %v2262_v10 = vcombine.high %v2205_v8, %v2221_v63  ;;  %v1676_v25 = vshrl.u32 %v1494_v58, 16  ;;  %v2269_v5 = vrot.slane %v2261_v17, %v6018_v22 }
 0x295   : > { %5022 = vmatpush3.bf16.xpose.msra.mxu0 %v2915_v20  ;;  %5023 = vmatprep.mubr.msk.bf16.mxu0 %vm5563_vm0, %v7199_v18  ;;  %v2301_v27 = vrot.slane %v2293_v56, %v6018_v22  ;;  %v2140_v19 = vrot.slane %v2126_v35, %v6018_v22  ;;  %v1672_v29 = vpack.i.b16 %v1671_v32, %v1670_v2  ;;  %v2961_v40 = vsel %vm2404_vm3, %v1669_v31, 0 }
 0x296   : > { %5033 = vmatprep.subr.bf16.mxu0 %v7199_v18  ;;  %v6629_v26 = vrot.slane %v958_v16, %v6018_v22  ;;  %v6631_v41 = vcombine.high %v2133_v24, %v2165_v46  ;;  %v2172_v61 = vrot.slane %v2158_v52, %v6018_v22  ;;  %v1678_v43 = vpack.i.b16 %v1677_v59, %v1676_v25 }
 0x297   : > { %v6635_v7 = vcombine.high %v2269_v5, %v2301_v27  ;;  %v2294_v44 = vcombine.high %v2237_v37, %v2253_v13  ;;  %v3053_v58 = vsel %vm2404_vm3, %v1675_v54, 0  ;;  %v2276_v33 = vrot.slane %v2262_v10, %v6018_v22 }
 0x298   : > { %v6638_v50 = vcombine.low %v2140_v19, %v2172_v61  ;;  %v6641_v2 = vcombine.high %v2140_v19, %v2172_v61  ;;  %v2345_v28 = vshrl.u32 %v6631_v41, 16  ;;  %v2076_v31 = vrot.slane %v2062_v60, %v6010_v12 }
 0x299   : > { %v2343_v16 = vpack.i.b16 %v6635_v7, %v6631_v41  ;;  %v2346_v8 = vshrl.u32 %v6635_v7, 16  ;;  %v3007_v63 = vsel %vm2404_vm3, %v1672_v29, 0  ;;  %v6653_v37 = vcombine.low %v2133_v24, %v2165_v46 }
 0x29a   : > { %5018 = vmatmul.mubr.msk.bf16.vlgmr.msra.gmra.mrb[24].mxu1 %vm2404_vm3, %v907_v53  ;;  %v2308_v13 = vrot.slane %v2294_v44, %v6018_v22  ;;  %v2092_v32 = vrot.slane %v2078_v62, %v6010_v12  ;;  %v3099_v39 = vsel %vm2404_vm3, %v1678_v43, 0  ;;  %v6663_v23 = vcombine.low %v2269_v5, %v2301_v27 }
 0x29b   : > { %5028 = vmatpush3.bf16.xpose.msra.mxu1 %v2961_v40  ;;  %5029 = vmatprep.mubr.msk.bf16.mxu1 %vm5563_vm0, %v7199_v18  ;;  %v6665_v60 = vpack.i.b16 %v2346_v8, %v2345_v28  ;;  %v2108_v53 = vrot.slane %v2094_v48, %v6010_v12  ;;  %v2353_v14 = vshrl.u32 %v6638_v50, 16  ;;  %v2124_v54 = vrot.slane %v2110_v38, %v6010_v12 }
 0x29c   : > { %5024 = vmatmul.mubr.msk.bf16.vlgmr.msra.gmra.mrb[24].mxu0 %vm2404_vm3, %v6585_v3  ;;  %5039 = vmatprep.subr.bf16.mxu1 %v7199_v18  ;;  %v6674_v57 = vcombine.low %v2276_v33, %v2308_v13  ;;  %v6677_v62 = vcombine.high %v2276_v33, %v2308_v13  ;;  %v2361_v51 = vshrl.u32 %v6641_v2, 16  ;;  %v2141_v45 = vcombine.low %v2076_v31, %v2092_v32 }
 0x29d   : > { %5034 = vmatpush3.bf16.xpose.msra.mxu0 %v3007_v63  ;;  %5035 = vmatprep.mubr.msk.bf16.mxu0 %vm5563_vm0, %v7199_v18  ;;  %v2212_v48 = vrot.slane %v2198_v6, %v6010_v12  ;;  %v7211_v3 = vcombine.high %v6425_v49, %v6438_v9  ;;  %v2173_v15 = vcombine.low %v2108_v53, %v2124_v54  ;;  %v2337_v5 = vshrl.u32 %v6653_v37, 16 }
 0x29e   : > { %5045 = vmatprep.subr.bf16.mxu0 %v7199_v18  ;;  %v2351_v36 = vpack.i.b16 %v6674_v57, %v6638_v50  ;;  %v2354_v0 = vshrl.u32 %v6674_v57, 16  ;;  %v2359_v38 = vpack.i.b16 %v6677_v62, %v6641_v2  ;;  %v2362_v47 = vshrl.u32 %v6677_v62, 16 }
 0x29f   : > { %v2228_v24 = vrot.slane %v7211_v3, %v6010_v12  ;;  %v2149_v4 = vrot.slane %v2141_v45, %v6018_v22  ;;  %v7212_v49 = vcombine.high %v6446_v55, %v6452_v34  ;;  %v7213_v6 = vcombine.high %v6448_v21, %v6458_v1 }
 0x2a0   : > { %v6710_v17 = vpack.i.b16 %v2354_v0, %v2353_v14  ;;  %v6712_v56 = vpack.i.b16 %v2362_v47, %v2361_v51  ;;  %v2142_v20 = vcombine.high %v2076_v31, %v2092_v32  ;;  %v2181_v46 = vrot.slane %v2173_v15, %v6018_v22 }
 0x2a1   : > { %v2244_v9 = vrot.slane %v7212_v49, %v6010_v12  ;;  %v2260_v59 = vrot.slane %v7213_v6, %v6010_v12  ;;  %v2277_v35 = vcombine.low %v2212_v48, %v2228_v24  ;;  %v2174_v10 = vcombine.high %v2108_v53, %v2124_v54 }
 0x2a2   : > { %v2278_v25 = vcombine.high %v2212_v48, %v2228_v24  ;;  %5030 = vmatmul.mubr.msk.bf16.vlgmr.msra.gmra.mrb[28].mxu1 %vm2404_vm3, %v6578_v42  ;;  %v2335_v55 = vpack.i.b16 %v6663_v23, %v6653_v37  ;;  %v2156_v34 = vrot.slane %v2142_v20, %v6018_v22  ;;  %v6724_v27 = vcombine.low %v2149_v4, %v2181_v46 }
 0x2a3   : > { %v2309_v52 = vcombine.low %v2244_v9, %v2260_v59  ;;  %v2285_v21 = vrot.slane %v2277_v35, %v6018_v22  ;;  %v2310_v1 = vcombine.high %v2244_v9, %v2260_v59  ;;  %5040 = vmatpush3.bf16.xpose.msra.mxu1 %v3053_v58  ;;  %5041 = vmatprep.mubr.msk.bf16.mxu1 %vm5563_vm0, %v7199_v18  ;;  %v2338_v42 = vshrl.u32 %v6663_v23, 16 }
 0x2a4   : > { %v6727_v29 = vcombine.high %v2149_v4, %v2181_v46  ;;  %5036 = vmatmul.mubr.msk.bf16.vlgmr.msra.gmra.mrb[28].mxu0 %vm2404_vm3, %v6629_v26  ;;  %5051 = vmatprep.subr.bf16.mxu1 %v7199_v18  ;;  %v2188_v61 = vrot.slane %v2174_v10, %v6018_v22  ;;  %v2292_v40 = vrot.slane %v2278_v25, %v6018_v22  ;;  %v2369_v58 = vshrl.u32 %v6724_v27, 16 }
 0x2a5   : > { %v2317_v19 = vrot.slane %v2309_v52, %v6018_v22  ;;  %v2324_v43 = vrot.slane %v2310_v1, %v6018_v22  ;;  %5046 = vmatpush3.bf16.xpose.msra.mxu0 %v3099_v39  ;;  %5047 = vmatprep.mubr.msk.bf16.mxu0 %vm5563_vm0, %v7199_v18  ;;  %v976_v0 = vcombine.high %v6629_v26, %v5582_v11  ;;  %v6791_v11 = vld [vmem:[%s393_s19] ss:$0 sm:$0xff]  ;;  %s4871_s19 = sshll.u32 %s5544_s27, 7  ;;  %s4655_s27 = scalar_lea.sflag [#allocation5], %s5853_s12 }
 0x2a6   : > { %v2377_v28 = vshrl.u32 %v6727_v29, 16  ;;  %5057 = vmatprep.subr.bf16.mxu0 %v7199_v18  ;;  %v6745_v8 = vcombine.low %v2156_v34, %v2188_v61  ;;  %v6749_v63 = vcombine.high %v2156_v34, %v2188_v61  ;;  %v2339_v4 = vpack.i.b16 %v2338_v42, %v2337_v5 }
 0x2a7   : > { %v6738_v44 = vcombine.low %v2285_v21, %v2317_v19  ;;  %v6741_v33 = vcombine.high %v2285_v21, %v2317_v19  ;;  %v6747_v31 = vcombine.low %v2292_v40, %v2324_v43  ;;  %v6751_v37 = vcombine.high %v2292_v40, %v2324_v43 }
 0x2a8   : > { %v2385_v14 = vshrl.u32 %v6745_v8, 16  ;;  %v2393_v3 = vshrl.u32 %v6749_v63, 16 }
 0x2a9   : > { %v2367_v13 = vpack.i.b16 %v6738_v44, %v6724_v27  ;;  %v2370_v32 = vshrl.u32 %v6738_v44, 16  ;;  %v2375_v39 = vpack.i.b16 %v6741_v33, %v6727_v29  ;;  %v2378_v23 = vshrl.u32 %v6741_v33, 16 }
 0x2aa   : > { %v2383_v53 = vpack.i.b16 %v6747_v31, %v6745_v8  ;;  %v2386_v54 = vshrl.u32 %v6747_v31, 16  ;;  %v2391_v51 = vpack.i.b16 %v6751_v37, %v6749_v63  ;;  %v2394_v24 = vshrl.u32 %v6751_v37, 16  ;;  %5042 = vmatmul.mubr.msk.bf16.vlgmr.msra.gmra.mrb[32].mxu1 %vm2404_vm3, %v6604_v30 }
 0x2ab   : > { %v6765_v45 = vpack.i.b16 %v2370_v32, %v2369_v58  ;;  %v6767_v48 = vpack.i.b16 %v2378_v23, %v2377_v28  ;;  %5052 = vmatpush3.bf16.msra.mxu1 %v2335_v55  ;;  %5053 = vmatprep.mubr.msk.bf16.mxu1 %vm5563_vm0, %v7199_v18 }
 0x2ac   : > { %v6775_v47 = vpack.i.b16 %v2386_v54, %v2385_v14  ;;  %v6779_v15 = vpack.i.b16 %v2394_v24, %v2393_v3  ;;  %5048 = vmatmul.mubr.msk.bf16.vlgmr.msra.gmra.mrb[32].mxu0 %vm2404_vm3, %v976_v0  ;;  %5063 = vmatprep.subr.bf16.mxu1 %v7199_v18 }
 0x2ad   : > { %5058 = vmatpush3.bf16.msra.mxu0 %v2339_v4  ;;  %5059 = vmatprep.mubr.msk.bf16.mxu0 %vm5563_vm0, %v7199_v18 }
 0x2ae   : > { %5069 = vmatprep.subr.bf16.mxu0 %v7199_v18 }
 0x337   : > { %v2445_v30 = vpop.f32.mrb[4].mxu1 }
 0x338   : > { %v6794_v26 = vadd.f32 %v6791_v11, %v2445_v30  ;;  %v4959_v49 = vpop.f32.mrb[5].mxu1 }
 0x339   : > { %v2448_v9 = vpop.f32.mrb[6].mxu1  ;;  %v2491_v6 = vpop.f32.mrb[4].mxu0 }
 0x33a   : > { %v6797_v59 = vadd.f32 %v6791_v11, %v2491_v6  ;;  %v4960_v35 = vpop.f32.mrb[7].mxu1  ;;  %v4965_v20 = vpop.f32.mrb[5].mxu0  ;;  %v3142_v46 = vsel %vm3141_vm4, %v6794_v26, -inf }
 0x33b   : > { %v2494_v52 = vpop.f32.mrb[6].mxu0  ;;  %3143 = vmax.xlane.f32.xlu1 %v3142_v46 }
 0x33c   : > { %v4966_v10 = vpop.f32.mrb[7].mxu0  ;;  %v3145_v25 = vsel %vm3141_vm4, %v6797_v59, -inf }
 0x33d   : > { %3146 = vmax.xlane.f32.xlu0 %v3145_v25 }
 0x340   : > { %v2537_v55 = vpop.f32.mrb[8].mxu1 }
 0x341   : > { %v6804_v21 = vadd.f32 %v6791_v11, %v2537_v55  ;;  %v4971_v34 = vpop.f32.mrb[9].mxu1 }
 0x342   : > { %v2540_v1 = vpop.f32.mrb[10].mxu1  ;;  %v2583_v5 = vpop.f32.mrb[8].mxu0 }
 0x343   : > { %v6807_v19 = vadd.f32 %v6791_v11, %v2583_v5  ;;  %v4972_v42 = vpop.f32.mrb[11].mxu1  ;;  %v4977_v61 = vpop.f32.mrb[9].mxu0  ;;  %v3148_v40 = vsel %vm3141_vm4, %v6804_v21, -inf }
 0x344   : > { %v2586_v43 = vpop.f32.mrb[10].mxu0  ;;  %3149 = vmax.xlane.f32.xlu0 %v3148_v40 }
 0x345   : > { %v4978_v58 = vpop.f32.mrb[11].mxu0  ;;  %v3151_v28 = vsel %vm3141_vm4, %v6807_v19, -inf }
 0x346   : > { %3152 = vmax.xlane.f32.xlu1 %v3151_v28 }
 0x355   : > { %v2629_v32 = vpop.f32.mrb[12].mxu1 }
 0x356   : > { %v6814_v23 = vadd.f32 %v6791_v11, %v2629_v32  ;;  %v4983_v14 = vpop.f32.mrb[13].mxu1 }
 0x357   : > { %v2632_v54 = vpop.f32.mrb[14].mxu1  ;;  %v2675_v3 = vpop.f32.mrb[12].mxu0 }
 0x358   : > { %v6817_v24 = vadd.f32 %v6791_v11, %v2675_v3  ;;  %v4984_v0 = vpop.f32.mrb[15].mxu1  ;;  %v4989_v4 = vpop.f32.mrb[13].mxu0  ;;  %v3154_v30 = vsel %vm3141_vm4, %v6814_v23, -inf }
 0x359   : > { %v2678_v49 = vpop.f32.mrb[14].mxu0  ;;  %3155 = vmax.xlane.f32.xlu0 %v3154_v30 }
 0x35a   : > { %v4990_v9 = vpop.f32.mrb[15].mxu0  ;;  %v3157_v6 = vsel %vm3141_vm4, %v6817_v24, -inf }
 0x35b   : > { %3158 = vmax.xlane.f32.xlu1 %v3157_v6 }
 0x35d   : > { %v2721_v35 = vpop.f32.mrb[16].mxu1 }
 0x35e   : > { %v6824_v20 = vadd.f32 %v6791_v11, %v2721_v35  ;;  %v4995_v46 = vpop.f32.mrb[17].mxu1 }
 0x35f   : > { %v2724_v52 = vpop.f32.mrb[18].mxu1  ;;  %v2767_v10 = vpop.f32.mrb[16].mxu0 }
 0x360   : > { %v6827_v25 = vadd.f32 %v6791_v11, %v2767_v10  ;;  %v4996_v55 = vpop.f32.mrb[19].mxu1  ;;  %v5001_v34 = vpop.f32.mrb[17].mxu0  ;;  %v3160_v1 = vsel %vm3141_vm4, %v6824_v20, -inf }
 0x361   : > { %v2770_v5 = vpop.f32.mrb[18].mxu0  ;;  %3161 = vmax.xlane.f32.xlu0 %v3160_v1 }
 0x362   : > { %v5002_v42 = vpop.f32.mrb[19].mxu0  ;;  %v3163_v61 = vsel %vm3141_vm4, %v6827_v25, -inf }
 0x363   : > { %3164 = vmax.xlane.f32.xlu1 %v3163_v61 }
 0x365   : > { %v2813_v40 = vpop.f32.mrb[20].mxu1 }
 0x366   : > { %v6834_v43 = vadd.f32 %v6791_v11, %v2813_v40  ;;  %v5007_v58 = vpop.f32.mrb[21].mxu1 }
 0x367   : > { %v2816_v28 = vpop.f32.mrb[22].mxu1  ;;  %v2859_v32 = vpop.f32.mrb[20].mxu0 }
 0x368   : > { %v6837_v14 = vadd.f32 %v6791_v11, %v2859_v32  ;;  %v5008_v54 = vpop.f32.mrb[23].mxu1  ;;  %v5013_v3 = vpop.f32.mrb[21].mxu0  ;;  %v3166_v0 = vsel %vm3141_vm4, %v6834_v43, -inf }
 0x369   : > { %v2862_v4 = vpop.f32.mrb[22].mxu0  ;;  %3167 = vmax.xlane.f32.xlu0 %v3166_v0 }
 0x36a   : > { %v5014_v30 = vpop.f32.mrb[23].mxu0  ;;  %v3169_v49 = vsel %vm3141_vm4, %v6837_v14, -inf }
 0x36b   : > { %3170 = vmax.xlane.f32.xlu1 %v3169_v49 }
 0x36d   : > { %v2905_v9 = vpop.f32.mrb[24].mxu1 }
 0x36e   : > { %v6844_v6 = vadd.f32 %v6791_v11, %v2905_v9  ;;  %v5019_v35 = vpop.f32.mrb[25].mxu1 }
 0x36f   : > { %v2908_v46 = vpop.f32.mrb[26].mxu1  ;;  %v2951_v52 = vpop.f32.mrb[24].mxu0 }
 0x370   : > { %v6847_v10 = vadd.f32 %v6791_v11, %v2951_v52  ;;  %v5020_v55 = vpop.f32.mrb[27].mxu1  ;;  %v5025_v34 = vpop.f32.mrb[25].mxu0  ;;  %v3172_v1 = vsel %vm3141_vm4, %v6844_v6, -inf }
 0x371   : > { %v2954_v5 = vpop.f32.mrb[26].mxu0  ;;  %3173 = vmax.xlane.f32.xlu0 %v3172_v1 }
 0x372   : > { %v5026_v42 = vpop.f32.mrb[27].mxu0  ;;  %v3175_v61 = vsel %vm3141_vm4, %v6847_v10, -inf }
 0x373   : > { %3176 = vmax.xlane.f32.xlu1 %v3175_v61 }
 0x375   : > { %v2997_v40 = vpop.f32.mrb[28].mxu1 }
 0x376   : > { %v6854_v58 = vadd.f32 %v6791_v11, %v2997_v40  ;;  %v5031_v28 = vpop.f32.mrb[29].mxu1 }
 0x377   : > { %v3000_v32 = vpop.f32.mrb[30].mxu1  ;;  %v3043_v54 = vpop.f32.mrb[28].mxu0 }
 0x378   : > { %v6857_v3 = vadd.f32 %v6791_v11, %v3043_v54  ;;  %v5032_v0 = vpop.f32.mrb[31].mxu1  ;;  %v5037_v4 = vpop.f32.mrb[29].mxu0  ;;  %v3178_v30 = vsel %vm3141_vm4, %v6854_v58, -inf }
 0x379   : > { %v3046_v49 = vpop.f32.mrb[30].mxu0  ;;  %3179 = vmax.xlane.f32.xlu0 %v3178_v30 }
 0x37a   : > { %v5038_v9 = vpop.f32.mrb[31].mxu0  ;;  %v3181_v35 = vsel %vm3141_vm4, %v6857_v3, -inf }
 0x37b   : > { %3182 = vmax.xlane.f32.xlu1 %v3181_v35 }
 0x37d   : > { %v3089_v46 = vpop.f32.mrb[32].mxu1 }
 0x37e   : > { %v6864_v52 = vadd.f32 %v6791_v11, %v3089_v46  ;;  %v5043_v55 = vpop.f32.mrb[33].mxu1 }
 0x37f   : > { %v3092_v34 = vpop.f32.mrb[34].mxu1  ;;  %v3135_v1 = vpop.f32.mrb[32].mxu0 }
 0x380   : > { %v6867_v5 = vadd.f32 %v6791_v11, %v3135_v1  ;;  %v5044_v42 = vpop.f32.mrb[35].mxu1  ;;  %v5049_v61 = vpop.f32.mrb[33].mxu0  ;;  %v3184_v40 = vsel %vm3141_vm4, %v6864_v52, -inf }
 0x381   : > { %v3138_v28 = vpop.f32.mrb[34].mxu0  ;;  %3185 = vmax.xlane.f32.xlu0 %v3184_v40 }
 0x382   : > { %v5050_v32 = vpop.f32.mrb[35].mxu0  ;;  %v3187_v54 = vsel %vm3141_vm4, %v6867_v5, -inf }
 0x383   : > { %3188 = vmax.xlane.f32.xlu1 %v3187_v54 }
 0x3c8   : > { %v3144_v0 = vpop.xlane.xlu1 %3143 }
 0x3c9   : > { %v3190_v4 = vsub.f32 %v6794_v26, %v3144_v0 }
 0x3ca   : > { %v3147_v30 = vpop.xlane.xlu0 %3146 }
 0x3cb   : > { %v3206_v49 = vmul.f32 1.442695, %v3190_v4  ;;  %v3191_v11 = vsub.f32 %v6797_v59, %v3147_v30 }
 0x3cd   : > { %5278 = vpow2.f32 %v3206_v49  ;;  %v3208_v9 = vmul.f32 1.442695, %v3191_v11 }
 0x3cf   : > { %5280 = vpow2.f32 %v3208_v9 }
 0x3d1   : > { %v3150_v35 = vpop.xlane.xlu0 %3149 }
 0x3d2   : > { %v3192_v46 = vsub.f32 %v6804_v21, %v3150_v35 }
 0x3d3   : > { %v3153_v55 = vpop.xlane.xlu1 %3152 }
 0x3d4   : > { %v3210_v34 = vmul.f32 1.442695, %v3192_v46  ;;  %v3193_v1 = vsub.f32 %v6807_v19, %v3153_v55 }
 0x3d6   : > { %5282 = vpow2.f32 %v3210_v34  ;;  %v3212_v42 = vmul.f32 1.442695, %v3193_v1 }
 0x3d7   : > { %v5279_v61 = vpop.eup %5278 }
 0x3d8   : > { %5284 = vpow2.f32 %v3212_v42  ;;  %v3238_v26 = vsel %vm3141_vm4, %v5279_v61, 0.0  ;;  %v3286_v40 = vpack.c.bf16 %v5279_v61, %v5279_v61 }
 0x3d9   : > { %v5281_v28 = vpop.eup %5280  ;;  %3239 = vadd.xlane.f32.xlu0 %v3238_v26 }
 0x3da   : > { %5054 = vmatmul.mubr.msk.bf16.vlgmr.msra.gmra.mrb[36].mxu1 %vm3141_vm4, %v3286_v40  ;;  %v3241_v59 = vsel %vm3141_vm4, %v5281_v28, 0.0  ;;  %v3287_v32 = vpack.c.bf16 %v5281_v28, %v5281_v28 }
 0x3db   : > { %5064 = vmatpush3.bf16.msra.mxu1 %v2343_v16  ;;  %3242 = vadd.xlane.f32.xlu1 %v3241_v59 }
 0x3dc   : > { %5060 = vmatmul.mubr.msk.bf16.vlgmr.msra.gmra.mrb[36].mxu0 %vm3141_vm4, %v3287_v32  ;;  %5065 = vmatprep.mubr.msk.bf16.mxu1 %vm5563_vm0, %v7199_v18 }
 0x3dd   : > { %5070 = vmatpush3.bf16.msra.mxu0 %v6665_v60  ;;  %5075 = vmatprep.subr.bf16.mxu1 %v7199_v18 }
 0x3de   : > { %5071 = vmatprep.mubr.msk.bf16.mxu0 %vm5563_vm0, %v7199_v18  ;;  %5081 = vmatprep.subr.bf16.mxu0 %v7199_v18 }
 0x3e0   : > { %v5283_v21 = vpop.eup %5282 }
 0x3e1   : > { %v3244_v19 = vsel %vm3141_vm4, %v5283_v21, 0.0  ;;  %v3288_v41 = vpack.c.bf16 %v5283_v21, %v5283_v21 }
 0x3e2   : > { %v5285_v7 = vpop.eup %5284  ;;  %3245 = vadd.xlane.f32.xlu0 %v3244_v19 }
 0x3e3   : > { %5066 = vmatmul.mubr.msk.bf16.vlgmr.msra.gmra.mrb[40].mxu1 %vm3141_vm4, %v3288_v41  ;;  %v3247_v16 = vsel %vm3141_vm4, %v5285_v7, 0.0  ;;  %v3289_v54 = vpack.c.bf16 %v5285_v7, %v5285_v7 }
 0x3e4   : > { %5076 = vmatpush3.bf16.msra.mxu1 %v2351_v36  ;;  %3248 = vadd.xlane.f32.xlu1 %v3247_v16 }
 0x3e5   : > { %5072 = vmatmul.mubr.msk.bf16.vlgmr.msra.gmra.mrb[40].mxu0 %vm3141_vm4, %v3289_v54  ;;  %5077 = vmatprep.mubr.msk.bf16.mxu1 %vm5563_vm0, %v7199_v18 }
 0x3e6   : > { %5082 = vmatpush3.bf16.msra.mxu0 %v6710_v17  ;;  %5087 = vmatprep.subr.bf16.mxu1 %v7199_v18  ;;  %v3156_v60 = vpop.xlane.xlu0 %3155 }
 0x3e7   : > { %5083 = vmatprep.mubr.msk.bf16.mxu0 %vm5563_vm0, %v7199_v18  ;;  %5093 = vmatprep.subr.bf16.mxu0 %v7199_v18  ;;  %v3194_v0 = vsub.f32 %v6814_v23, %v3156_v60 }
 0x3e8   : > { %v3159_v50 = vpop.xlane.xlu1 %3158 }
 0x3e9   : > { %v3214_v57 = vmul.f32 1.442695, %v3194_v0  ;;  %v3195_v36 = vsub.f32 %v6817_v24, %v3159_v50 }
 0x3eb   : > { %5286 = vpow2.f32 %v3214_v57  ;;  %v3216_v4 = vmul.f32 1.442695, %v3195_v36 }
 0x3ed   : > { %5288 = vpow2.f32 %v3216_v4 }
 0x3ee   : > { %v3162_v30 = vpop.xlane.xlu0 %3161 }
 0x3ef   : > { %v3196_v17 = vsub.f32 %v6824_v20, %v3162_v30 }
 0x3f0   : > { %v3165_v49 = vpop.xlane.xlu1 %3164 }
 0x3f1   : > { %v3218_v11 = vmul.f32 1.442695, %v3196_v17  ;;  %v3197_v9 = vsub.f32 %v6827_v25, %v3165_v49 }
 0x3f3   : > { %5290 = vpow2.f32 %v3218_v11  ;;  %v3220_v35 = vmul.f32 1.442695, %v3197_v9 }
 0x3f5   : > { %v5287_v46 = vpop.eup %5286  ;;  %5292 = vpow2.f32 %v3220_v35 }
 0x3f6   : > { %v3168_v55 = vpop.xlane.xlu0 %3167  ;;  %v3250_v23 = vsel %vm3141_vm4, %v5287_v46, 0.0  ;;  %v3290_v34 = vpack.c.bf16 %v5287_v46, %v5287_v46 }
 0x3f7   : > { %v5289_v1 = vpop.eup %5288  ;;  %v3198_v24 = vsub.f32 %v6834_v43, %v3168_v55  ;;  %3251 = vadd.xlane.f32.xlu0 %v3250_v23 }
 0x3f8   : > { %v3171_v42 = vpop.xlane.xlu1 %3170  ;;  %5078 = vmatmul.mubr.msk.bf16.vlgmr.msra.gmra.mrb[44].mxu1 %vm3141_vm4, %v3290_v34  ;;  %v3253_v20 = vsel %vm3141_vm4, %v5289_v1, 0.0  ;;  %v3291_v61 = vpack.c.bf16 %v5289_v1, %v5289_v1 }
 0x3f9   : > { %v3222_v26 = vmul.f32 1.442695, %v3198_v24  ;;  %v3199_v25 = vsub.f32 %v6837_v14, %v3171_v42  ;;  %5088 = vmatpush3.bf16.msra.mxu1 %v2359_v38  ;;  %3254 = vadd.xlane.f32.xlu1 %v3253_v20 }
 0x3fa   : > { %5084 = vmatmul.mubr.msk.bf16.vlgmr.msra.gmra.mrb[44].mxu0 %vm3141_vm4, %v3291_v61  ;;  %5089 = vmatprep.mubr.msk.bf16.mxu1 %vm5563_vm0, %v7199_v18 }
 0x3fb   : > { %5294 = vpow2.f32 %v3222_v26  ;;  %v3224_v43 = vmul.f32 1.442695, %v3199_v25  ;;  %5094 = vmatpush3.bf16.msra.mxu0 %v6712_v56  ;;  %5099 = vmatprep.subr.bf16.mxu1 %v7199_v18 }
 0x3fc   : > { %5095 = vmatprep.mubr.msk.bf16.mxu0 %vm5563_vm0, %v7199_v18  ;;  %5105 = vmatprep.subr.bf16.mxu0 %v7199_v18 }
 0x3fd   : > { %v5291_v14 = vpop.eup %5290  ;;  %5296 = vpow2.f32 %v3224_v43 }
 0x3fe   : > { %v3174_v2 = vpop.xlane.xlu0 %3173  ;;  %v3256_v62 = vsel %vm3141_vm4, %v5291_v14, 0.0  ;;  %v3292_v38 = vpack.c.bf16 %v5291_v14, %v5291_v14 }
 0x3ff   : > { %v5293_v40 = vpop.eup %5292  ;;  %v3200_v28 = vsub.f32 %v6844_v6, %v3174_v2  ;;  %3257 = vadd.xlane.f32.xlu0 %v3256_v62 }
 0x400   : > { %v3177_v59 = vpop.xlane.xlu1 %3176  ;;  %5090 = vmatmul.mubr.msk.bf16.vlgmr.msra.gmra.mrb[48].mxu1 %vm3141_vm4, %v3292_v38  ;;  %v3259_v56 = vsel %vm3141_vm4, %v5293_v40, 0.0  ;;  %v3293_v32 = vpack.c.bf16 %v5293_v40, %v5293_v40 }
 0x401   : > { %v3226_v21 = vmul.f32 1.442695, %v3200_v28  ;;  %v3201_v19 = vsub.f32 %v6847_v10, %v3177_v59  ;;  %5100 = vmatpush3.bf16.msra.mxu1 %v2367_v13  ;;  %3260 = vadd.xlane.f32.xlu1 %v3259_v56 }
 0x402   : > { %5096 = vmatmul.mubr.msk.bf16.vlgmr.msra.gmra.mrb[48].mxu0 %vm3141_vm4, %v3293_v32  ;;  %5101 = vmatprep.mubr.msk.bf16.mxu1 %vm5563_vm0, %v7199_v18 }
 0x403   : > { %5298 = vpow2.f32 %v3226_v21  ;;  %v3228_v6 = vmul.f32 1.442695, %v3201_v19  ;;  %5106 = vmatpush3.bf16.msra.mxu0 %v6765_v45  ;;  %5111 = vmatprep.subr.bf16.mxu1 %v7199_v18 }
 0x404   : > { %5107 = vmatprep.mubr.msk.bf16.mxu0 %vm5563_vm0, %v7199_v18  ;;  %5117 = vmatprep.subr.bf16.mxu0 %v7199_v18 }
 0x405   : > { %v5295_v10 = vpop.eup %5294  ;;  %5300 = vpow2.f32 %v3228_v6 }
 0x406   : > { %v3180_v27 = vpop.xlane.xlu0 %3179  ;;  %v3262_v44 = vsel %vm3141_vm4, %v5295_v10, 0.0  ;;  %v3294_v13 = vpack.c.bf16 %v5295_v10, %v5295_v10 }
 0x407   : > { %v5297_v41 = vpop.eup %5296  ;;  %v3202_v7 = vsub.f32 %v6854_v58, %v3180_v27  ;;  %3263 = vadd.xlane.f32.xlu0 %v3262_v44 }
 0x408   : > { %v3183_v16 = vpop.xlane.xlu1 %3182  ;;  %5102 = vmatmul.mubr.msk.bf16.vlgmr.msra.gmra.mrb[52].mxu1 %vm3141_vm4, %v3294_v13  ;;  %v3265_v45 = vsel %vm3141_vm4, %v5297_v41, 0.0  ;;  %v3295_v54 = vpack.c.bf16 %v5297_v41, %v5297_v41 }
 0x409   : > { %v3230_v60 = vmul.f32 1.442695, %v3202_v7  ;;  %v3203_v0 = vsub.f32 %v6857_v3, %v3183_v16  ;;  %5112 = vmatpush3.bf16.msra.mxu1 %v2375_v39  ;;  %3266 = vadd.xlane.f32.xlu1 %v3265_v45 }
 0x40a   : > { %5108 = vmatmul.mubr.msk.bf16.vlgmr.msra.gmra.mrb[52].mxu0 %vm3141_vm4, %v3295_v54  ;;  %5113 = vmatprep.mubr.msk.bf16.mxu1 %vm5563_vm0, %v7199_v18 }
 0x40b   : > { %5302 = vpow2.f32 %v3230_v60  ;;  %v3232_v58 = vmul.f32 1.442695, %v3203_v0  ;;  %5118 = vmatpush3.bf16.msra.mxu0 %v6767_v48  ;;  %5123 = vmatprep.subr.bf16.mxu1 %v7199_v18 }
 0x40c   : > { %5119 = vmatprep.mubr.msk.bf16.mxu0 %vm5563_vm0, %v7199_v18  ;;  %5129 = vmatprep.subr.bf16.mxu0 %v7199_v18 }
 0x40d   : > { %v5299_v3 = vpop.eup %5298  ;;  %5304 = vpow2.f32 %v3232_v58 }
 0x40e   : > { %v3186_v29 = vpop.xlane.xlu0 %3185  ;;  %v3268_v33 = vsel %vm3141_vm4, %v5299_v3, 0.0  ;;  %v3296_v39 = vpack.c.bf16 %v5299_v3, %v5299_v3 }
 0x40f   : > { %v5301_v50 = vpop.eup %5300  ;;  %v3204_v57 = vsub.f32 %v6864_v52, %v3186_v29  ;;  %3269 = vadd.xlane.f32.xlu0 %v3268_v33 }
 0x410   : > { %v3189_v36 = vpop.xlane.xlu1 %3188  ;;  %5114 = vmatmul.mubr.msk.bf16.vlgmr.msra.gmra.mrb[56].mxu1 %vm3141_vm4, %v3296_v39  ;;  %v3271_v48 = vsel %vm3141_vm4, %v5301_v50, 0.0  ;;  %v3297_v4 = vpack.c.bf16 %v5301_v50, %v5301_v50 }
 0x411   : > { %v3234_v30 = vmul.f32 1.442695, %v3204_v57  ;;  %v3205_v17 = vsub.f32 %v6867_v5, %v3189_v36  ;;  %5124 = vmatpush3.bf16.msra.mxu1 %v2383_v53  ;;  %3272 = vadd.xlane.f32.xlu1 %v3271_v48 }
 0x412   : > { %5120 = vmatmul.mubr.msk.bf16.vlgmr.msra.gmra.mrb[56].mxu0 %vm3141_vm4, %v3297_v4  ;;  %5125 = vmatprep.mubr.msk.bf16.mxu1 %vm5563_vm0, %v7199_v18 }
 0x413   : > { %5306 = vpow2.f32 %v3234_v30  ;;  %v3236_v52 = vmul.f32 1.442695, %v3205_v17  ;;  %5130 = vmatpush3.bf16.msra.mxu0 %v6775_v47  ;;  %5135 = vmatprep.subr.bf16.mxu1 %v7199_v18 }
 0x414   : > { %5131 = vmatprep.mubr.msk.bf16.mxu0 %vm5563_vm0, %v7199_v18  ;;  %5141 = vmatprep.subr.bf16.mxu0 %v7199_v18 }
 0x415   : > { %v5303_v5 = vpop.eup %5302  ;;  %5308 = vpow2.f32 %v3236_v52 }
 0x416   : > { %v3274_v8 = vsel %vm3141_vm4, %v5303_v5, 0.0  ;;  %v3298_v31 = vpack.c.bf16 %v5303_v5, %v5303_v5 }
 0x417   : > { %v5305_v53 = vpop.eup %5304  ;;  %3275 = vadd.xlane.f32.xlu0 %v3274_v8 }
 0x418   : > { %5126 = vmatmul.mubr.msk.bf16.vlgmr.msra.gmra.mrb[60].mxu1 %vm3141_vm4, %v3298_v31  ;;  %v3277_v49 = vsel %vm3141_vm4, %v5305_v53, 0.0  ;;  %v3299_v11 = vpack.c.bf16 %v5305_v53, %v5305_v53 }
 0x419   : > { %5136 = vmatpush3.bf16.msra.mxu1 %v2391_v51  ;;  %3278 = vadd.xlane.f32.xlu1 %v3277_v49 }
 0x41a   : > { %5132 = vmatmul.mubr.msk.bf16.vlgmr.msra.gmra.mrb[60].mxu0 %vm3141_vm4, %v3299_v11  ;;  %5137 = vmatprep.mubr.msk.bf16.mxu1 %vm5563_vm0, %v7199_v18 }
 0x41b   : > { %5142 = vmatpush3.bf16.msra.mxu0 %v6779_v15  ;;  %5143 = vmatprep.mubr.msk.bf16.mxu0 %vm5563_vm0, %v7199_v18 }
 0x41d   : > { %v5307_v47 = vpop.eup %5306 }
 0x41e   : > { %v3280_v9 = vsel %vm3141_vm4, %v5307_v47, 0.0  ;;  %v3300_v35 = vpack.c.bf16 %v5307_v47, %v5307_v47 }
 0x41f   : > { %v5309_v46 = vpop.eup %5308  ;;  %3281 = vadd.xlane.f32.xlu0 %v3280_v9 }
 0x420   : > { %5138 = vmatmul.mubr.msk.bf16.vlgmr.msra.gmra.mrb[64].mxu1 %vm3141_vm4, %v3300_v35  ;;  %v3283_v63 = vsel %vm3141_vm4, %v5309_v46, 0.0  ;;  %v3301_v37 = vpack.c.bf16 %v5309_v46, %v5309_v46 }
 0x421   : > { %3284 = vadd.xlane.f32.xlu1 %v3283_v63 }
 0x422   : > { %5144 = vmatmul.mubr.msk.bf16.vlgmr.msra.gmra.mrb[64].mxu0 %vm3141_vm4, %v3301_v37 }
 0x466   : > { %v3240_v51 = vpop.xlane.xlu0 %3239 }
 0x467   : > { %5310 = vrcp.f32 %v3240_v51 }
 0x468   : > { %v3243_v55 = vpop.xlane.xlu1 %3242 }
 0x46f   : > { %v3246_v15 = vpop.xlane.xlu0 %3245 }
 0x470   : > { %5312 = vrcp.f32 %v3246_v15 }
 0x471   : > { %v3249_v23 = vpop.xlane.xlu1 %3248  ;;  %5314 = vrcp.f32 %v3243_v55  ;;  %v5311_v25 = vpop.eup %5310 }
 0x472   : > { %5316 = vrcp.f32 %v3249_v23 }
 0x47a   : > { %v5313_v43 = vpop.eup %5312 }
 0x47b   : > { %v5315_v2 = vpop.eup %5314 }
 0x47c   : > { %v5317_v28 = vpop.eup %5316 }
 0x484   : > { %v3252_v36 = vpop.xlane.xlu0 %3251 }
 0x485   : > { %5318 = vrcp.f32 %v3252_v36 }
 0x486   : > { %v3255_v52 = vpop.xlane.xlu1 %3254 }
 0x487   : > { %5320 = vrcp.f32 %v3255_v52 }
 0x48c   : > { %v3258_v49 = vpop.xlane.xlu0 %3257 }
 0x48d   : > { %5322 = vrcp.f32 %v3258_v49 }
 0x48e   : > { %v3261_v46 = vpop.xlane.xlu1 %3260 }
 0x48f   : > { %5324 = vrcp.f32 %v3261_v46 }
 0x4ad   : > { %v3339_v18 = vpop.f32.mrb[36].mxu1 }
 0x4ae   : > { %v5055_v34 = vpop.f32.mrb[37].mxu1  ;;  %v4006_v62 = vmul.f32 %v5311_v25, %v3339_v18  ;;  %v5319_v25 = vpop.eup %5318 }
 0x4af   : > { %v3342_v1 = vpop.f32.mrb[38].mxu1  ;;  %v3382_v24 = vpop.f32.mrb[36].mxu0 }
 0x4b0   : > { %v5056_v42 = vpop.f32.mrb[39].mxu1  ;;  %v5061_v20 = vpop.f32.mrb[37].mxu0  ;;  %v4007_v32 = vmul.f32 %v5315_v2, %v3382_v24 }
 0x4b1   : > { %v3385_v61 = vpop.f32.mrb[38].mxu0 }
 0x4b2   : > { %v5062_v26 = vpop.f32.mrb[39].mxu0 }
 0x4b6   : > { %v3425_v14 = vpop.f32.mrb[40].mxu1 }
 0x4b7   : > { %v4008_v38 = vmul.f32 %v5313_v43, %v3425_v14  ;;  %v5067_v40 = vpop.f32.mrb[41].mxu1  ;;  %v3264_v14 = vpop.xlane.xlu0 %3263 }
 0x4b8   : > { %v3428_v59 = vpop.f32.mrb[42].mxu1  ;;  %v3468_v56 = vpop.f32.mrb[40].mxu0  ;;  %5326 = vrcp.f32 %v3264_v14 }
 0x4b9   : > { %v4022_v21 = vcombine.low %v4006_v62, %v4008_v38  ;;  %v4023_v19 = vcombine.high %v4006_v62, %v4008_v38  ;;  %v4009_v6 = vmul.f32 %v5317_v28, %v3468_v56  ;;  %v5068_v10 = vpop.f32.mrb[43].mxu1  ;;  %v5073_v27 = vpop.f32.mrb[41].mxu0 }
 0x4ba   : > { %v3471_v44 = vpop.f32.mrb[42].mxu0  ;;  %v5321_v62 = vpop.eup %5320 }
 0x4bb   : > { %v4038_v13 = vcombine.low %v4007_v32, %v4009_v6  ;;  %v4039_v41 = vcombine.high %v4007_v32, %v4009_v6  ;;  %v5074_v7 = vpop.f32.mrb[43].mxu0  ;;  %v4030_v16 = vrot.slane %v4022_v21, %v6010_v12  ;;  %v4037_v45 = vrot.slane %v4023_v19, %v6010_v12  ;;  %v5323_v38 = vpop.eup %5322 }
 0x4bc   : > { %v3267_v40 = vpop.xlane.xlu1 %3266  ;;  %v3270_v59 = vpop.xlane.xlu0 %3269 }
 0x4bd   : > { %v4046_v54 = vrot.slane %v4038_v13, %v6010_v12  ;;  %v4053_v60 = vrot.slane %v4039_v41, %v6010_v12  ;;  %v5325_v19 = vpop.eup %5324  ;;  %5328 = vrcp.f32 %v3267_v40 }
 0x4be   : > { %5330 = vrcp.f32 %v3270_v59 }
 0x4bf   : > { %v4086_v0 = vcombine.low %v4030_v16, %v4046_v54  ;;  %v4087_v58 = vcombine.high %v4030_v16, %v4046_v54  ;;  %v4102_v3 = vcombine.low %v4037_v45, %v4053_v60  ;;  %v4103_v29 = vcombine.high %v4037_v45, %v4053_v60 }
 0x4c0   : > { %v3273_v54 = vpop.xlane.xlu1 %3272 }
 0x4c1   : > { %v4094_v33 = vrot.slane %v4086_v0, %v6018_v22  ;;  %v4101_v39 = vrot.slane %v4087_v58, %v6018_v22  ;;  %v4110_v50 = vrot.slane %v4102_v3, %v6018_v22  ;;  %v4117_v57 = vrot.slane %v4103_v29, %v6018_v22 }
 0x4c2   : > { %5332 = vrcp.f32 %v3273_v54 }
 0x4c3   : > { %v4854_v48 = vcombine.low %v4094_v33, %v4101_v39  ;;  %v4856_v4 = vcombine.high %v4094_v33, %v4101_v39  ;;  %v4858_v30 = vcombine.low %v4110_v50, %v4117_v57  ;;  %v4860_v17 = vcombine.high %v4110_v50, %v4117_v57 }
 0x4c5   : > { %v4302_v5 = vrot.slane %v4854_v48, %v6010_v12  ;;  %v4318_v8 = vrot.slane %v4856_v4, %v6010_v12  ;;  %v4334_v31 = vrot.slane %v4858_v30, %v6010_v12  ;;  %v4350_v53 = vrot.slane %v4860_v17, %v6010_v12 }
 0x4c7   : > { %v4359_v11 = vcombine.high %v4302_v5, %v4318_v8  ;;  %v4391_v47 = vcombine.high %v4334_v31, %v4350_v53  ;;  %v4358_v9 = vcombine.low %v4302_v5, %v4318_v8  ;;  %v4390_v35 = vcombine.low %v4334_v31, %v4350_v53 }
 0x4c9   : > { %v4373_v63 = vrot.slane %v4359_v11, %v6018_v22  ;;  %v4405_v37 = vrot.slane %v4391_v47, %v6018_v22  ;;  %v7004_v51 = vrot.slane %v4358_v9, %v6018_v22  ;;  %v7007_v55 = vrot.slane %v4390_v35, %v6018_v22  ;;  %v3276_v9 = vpop.xlane.xlu0 %3275 }
 0x4ca   : > { %5334 = vrcp.f32 %v3276_v9 }
 0x4cb   : > { %v4424_v15 = vcombine.low %v4373_v63, %v4405_v37  ;;  %v4423_v23 = vcombine.high %v7004_v51, %v7007_v55  ;;  %v4425_v18 = vcombine.high %v4373_v63, %v4405_v37  ;;  %v4422_v34 = vcombine.low %v7004_v51, %v7007_v55  ;;  %v3511_v1 = vpop.f32.mrb[44].mxu1 }
 0x4cc   : > { %v5079_v24 = vpop.f32.mrb[45].mxu1  ;;  %v4010_v56 = vmul.f32 %v5319_v25, %v3511_v1 }
 0x4cd   : > { %4571 = vrot.lane.b32.xlu1 %v4424_v15, %s5578_s9  ;;  %4567 = vrot.lane.b32.xlu0 %v4423_v23, %s5579_s14  ;;  %v3514_v42 = vpop.f32.mrb[46].mxu1  ;;  %v3554_v20 = vpop.f32.mrb[44].mxu0 }
 0x4ce   : > { %v5080_v61 = vpop.f32.mrb[47].mxu1  ;;  %v5085_v26 = vpop.f32.mrb[45].mxu0  ;;  %v4011_v27 = vmul.f32 %v5321_v62, %v3554_v20 }
 0x4cf   : > { %v3557_v43 = vpop.f32.mrb[46].mxu0  ;;  %v5327_v23 = vpop.eup %5326 }
 0x4d0   : > { %v5086_v2 = vpop.f32.mrb[47].mxu0  ;;  %v3279_v26 = vpop.xlane.xlu1 %3278 }
 0x4d1   : > { %4575 = vrot.lane.b32.xlu1 %v4425_v18, %s5577_s30  ;;  %v5329_v18 = vpop.eup %5328  ;;  %v3282_v14 = vpop.xlane.xlu0 %3281  ;;  %5336 = vrcp.f32 %v3279_v26 }
 0x4d2   : > { %v5331_v61 = vpop.eup %5330  ;;  %5338 = vrcp.f32 %v3282_v14 }
 0x4d3   : > { %v3597_v28 = vpop.f32.mrb[48].mxu1  ;;  %v5333_v59 = vpop.eup %5332 }
 0x4d4   : > { %v4012_v32 = vmul.f32 %v5323_v38, %v3597_v28  ;;  %v5091_v21 = vpop.f32.mrb[49].mxu1 }
 0x4d5   : > { %v3600_v6 = vpop.f32.mrb[50].mxu1  ;;  %v3640_v10 = vpop.f32.mrb[48].mxu0 }
 0x4d6   : > { %v4054_v44 = vcombine.low %v4010_v56, %v4012_v32  ;;  %v4055_v13 = vcombine.high %v4010_v56, %v4012_v32  ;;  %v4013_v41 = vmul.f32 %v5325_v19, %v3640_v10  ;;  %v5092_v7 = vpop.f32.mrb[51].mxu1  ;;  %v5097_v16 = vpop.f32.mrb[49].mxu0 }
 0x4d7   : > { %v3643_v45 = vpop.f32.mrb[50].mxu0 }
 0x4d8   : > { %v4070_v60 = vcombine.low %v4011_v27, %v4013_v41  ;;  %v4071_v0 = vcombine.high %v4011_v27, %v4013_v41  ;;  %v5098_v58 = vpop.f32.mrb[51].mxu0  ;;  %v4062_v3 = vrot.slane %v4054_v44, %v6010_v12  ;;  %v4069_v29 = vrot.slane %v4055_v13, %v6010_v12 }
 0x4da   : > { %v4078_v33 = vrot.slane %v4070_v60, %v6010_v12  ;;  %v4085_v39 = vrot.slane %v4071_v0, %v6010_v12  ;;  %v3285_v60 = vpop.xlane.xlu1 %3284 }
 0x4db   : > { %v3683_v50 = vpop.f32.mrb[52].mxu1  ;;  %5340 = vrcp.f32 %v3285_v60 }
 0x4dc   : > { %v4118_v57 = vcombine.low %v4062_v3, %v4078_v33  ;;  %v4119_v36 = vcombine.high %v4062_v3, %v4078_v33  ;;  %v4134_v48 = vcombine.low %v4069_v29, %v4085_v39  ;;  %v4135_v4 = vcombine.high %v4069_v29, %v4085_v39  ;;  %v5103_v30 = vpop.f32.mrb[53].mxu1 }
 0x4dd   : > { %v3686_v17 = vpop.f32.mrb[54].mxu1  ;;  %v3726_v52 = vpop.f32.mrb[52].mxu0  ;;  %v4014_v25 = vmul.f32 %v5327_v23, %v3683_v50 }
 0x4de   : > { %v4126_v5 = vrot.slane %v4118_v57, %v6018_v22  ;;  %v4133_v8 = vrot.slane %v4119_v36, %v6018_v22  ;;  %v4142_v31 = vrot.slane %v4134_v48, %v6018_v22  ;;  %v4149_v53 = vrot.slane %v4135_v4, %v6018_v22  ;;  %v5104_v49 = vpop.f32.mrb[55].mxu1  ;;  %v5109_v11 = vpop.f32.mrb[53].mxu0 }
 0x4df   : > { %v3729_v47 = vpop.f32.mrb[54].mxu0  ;;  %v4015_v56 = vmul.f32 %v5329_v18, %v3726_v52 }
 0x4e0   : > { %v4855_v35 = vcombine.low %v4126_v5, %v4133_v8  ;;  %v4857_v46 = vcombine.high %v4126_v5, %v4133_v8  ;;  %v4859_v63 = vcombine.low %v4142_v31, %v4149_v53  ;;  %v4861_v37 = vcombine.high %v4142_v31, %v4149_v53  ;;  %v5110_v15 = vpop.f32.mrb[55].mxu0 }
 0x4e2   : > { %v4309_v1 = vrot.slane %v4855_v35, %v6010_v12  ;;  %v4325_v24 = vrot.slane %v4857_v46, %v6010_v12  ;;  %v4341_v42 = vrot.slane %v4859_v63, %v6010_v12  ;;  %v4357_v20 = vrot.slane %v4861_v37, %v6010_v12  ;;  %v5335_v37 = vpop.eup %5334 }
 0x4e3   : > { %v3769_v43 = vpop.f32.mrb[56].mxu1 }
 0x4e4   : > { %v4016_v2 = vmul.f32 %v5331_v61, %v3769_v43  ;;  %v5115_v62 = vpop.f32.mrb[57].mxu1  ;;  %v4374_v38 = vcombine.low %v4309_v1, %v4325_v24  ;;  %v4406_v40 = vcombine.low %v4341_v42, %v4357_v20  ;;  %v4375_v28 = vcombine.high %v4309_v1, %v4325_v24 }
 0x4e5   : > { %v3772_v32 = vpop.f32.mrb[58].mxu1  ;;  %v3812_v21 = vpop.f32.mrb[56].mxu0  ;;  %v4407_v19 = vcombine.high %v4341_v42, %v4357_v20 }
 0x4e6   : > { %v4158_v6 = vcombine.low %v4014_v25, %v4016_v2  ;;  %v4159_v10 = vcombine.high %v4014_v25, %v4016_v2  ;;  %v4017_v27 = vmul.f32 %v5333_v59, %v3812_v21  ;;  %v5116_v44 = vpop.f32.mrb[59].mxu1  ;;  %v5121_v13 = vpop.f32.mrb[57].mxu0  ;;  %v4382_v41 = vrot.slane %v4374_v38, %v6018_v22 }
 0x4e7   : > { %v3815_v7 = vpop.f32.mrb[58].mxu0  ;;  %v4414_v16 = vrot.slane %v4406_v40, %v6018_v22  ;;  %v4389_v45 = vrot.slane %v4375_v28, %v6018_v22  ;;  %v4421_v54 = vrot.slane %v4407_v19, %v6018_v22  ;;  %v5337_v20 = vpop.eup %5336 }
 0x4e8   : > { %v4174_v0 = vcombine.low %v4015_v56, %v4017_v27  ;;  %v4175_v58 = vcombine.high %v4015_v56, %v4017_v27  ;;  %v5122_v3 = vpop.f32.mrb[59].mxu0  ;;  %v4166_v57 = vrot.slane %v4158_v6, %v6010_v12  ;;  %v4173_v36 = vrot.slane %v4159_v10, %v6010_v12  ;;  %v5339_v61 = vpop.eup %5338 }
 0x4e9   : > { %v4427_v29 = vcombine.high %v4382_v41, %v4414_v16  ;;  %v4426_v33 = vcombine.low %v4382_v41, %v4414_v16  ;;  %v4429_v39 = vcombine.high %v4389_v45, %v4421_v54  ;;  %v4428_v50 = vcombine.low %v4389_v45, %v4421_v54  ;;  %v5341_v32 = vpop.eup %5340 }
 0x4ea   : > { %v4182_v48 = vrot.slane %v4174_v0, %v6010_v12  ;;  %v4189_v4 = vrot.slane %v4175_v58, %v6010_v12 }
 0x4eb   : > { %4583 = vrot.lane.b32.xlu1 %v4427_v29, %s5575_s11  ;;  %4579 = vrot.lane.b32.xlu0 %v4426_v33, %s5576_s16  ;;  %v3855_v30 = vpop.f32.mrb[60].mxu1 }
 0x4ec   : > { %v4222_v17 = vcombine.low %v4166_v57, %v4182_v48  ;;  %v4223_v52 = vcombine.high %v4166_v57, %v4182_v48  ;;  %v4238_v5 = vcombine.low %v4173_v36, %v4189_v4  ;;  %v4239_v8 = vcombine.high %v4173_v36, %v4189_v4  ;;  %v5127_v31 = vpop.f32.mrb[61].mxu1 }
 0x4ed   : > { %v3858_v53 = vpop.f32.mrb[62].mxu1  ;;  %v3898_v49 = vpop.f32.mrb[60].mxu0  ;;  %v4018_v2 = vmul.f32 %v5335_v37, %v3855_v30 }
 0x4ee   : > { %v4230_v11 = vrot.slane %v4222_v17, %v6018_v22  ;;  %v4237_v47 = vrot.slane %v4223_v52, %v6018_v22  ;;  %v4246_v9 = vrot.slane %v4238_v5, %v6018_v22  ;;  %v4253_v35 = vrot.slane %v4239_v8, %v6018_v22  ;;  %v5128_v46 = vpop.f32.mrb[63].mxu1  ;;  %v5133_v63 = vpop.f32.mrb[61].mxu0 }
 0x4ef   : > { %4591 = vrot.lane.b32.xlu1 %v4429_v39, %s5573_s0  ;;  %4587 = vrot.lane.b32.xlu0 %v4428_v50, %s5574_s5  ;;  %v3901_v15 = vpop.f32.mrb[62].mxu0  ;;  %v4019_v21 = vmul.f32 %v5337_v20, %v3898_v49  ;;  %s5583_s5 = smov [#allocation11]  }
 0x4f0   : > { %v4862_v23 = vcombine.low %v4230_v11, %v4237_v47  ;;  %v4864_v18 = vcombine.high %v4230_v11, %v4237_v47  ;;  %v4866_v1 = vcombine.low %v4246_v9, %v4253_v35  ;;  %v4868_v24 = vcombine.high %v4246_v9, %v4253_v35  ;;  %v5134_v42 = vpop.f32.mrb[63].mxu0  ;;  %s5462_s11 = sshll.u32 %s5583_s5, 4  ;;  %s5463_s11 = int_to_ptr.vmem [resolvable:$false] %s5462_s11 }
 0x4f1   : > { %s5464_s16 = scalar_lea.vmem %s5463_s11, 256 }
 0x4f2   : > { %v4438_v26 = vrot.slane %v4862_v23, %v6010_v12  ;;  %v4454_v25 = vrot.slane %v4864_v18, %v6010_v12  ;;  %v4470_v43 = vrot.slane %v4866_v1, %v6010_v12  ;;  %v4486_v14 = vrot.slane %v4868_v24, %v6010_v12 }
 0x4f3   : > { %v3941_v62 = vpop.f32.mrb[64].mxu1 }
 0x4f4   : > { %v4020_v38 = vmul.f32 %v5339_v61, %v3941_v62  ;;  %v5139_v40 = vpop.f32.mrb[65].mxu1  ;;  %v4494_v28 = vcombine.low %v4438_v26, %v4454_v25  ;;  %v4526_v59 = vcombine.low %v4470_v43, %v4486_v14  ;;  %v4495_v56 = vcombine.high %v4438_v26, %v4454_v25 }
 0x4f5   : > { %v3944_v19 = vpop.f32.mrb[66].mxu1  ;;  %v3984_v6 = vpop.f32.mrb[64].mxu0  ;;  %v4527_v10 = vcombine.high %v4470_v43, %v4486_v14 }
 0x4f6   : > { %v4190_v27 = vcombine.low %v4018_v2, %v4020_v38  ;;  %v4191_v44 = vcombine.high %v4018_v2, %v4020_v38  ;;  %v4021_v13 = vmul.f32 %v5341_v32, %v3984_v6  ;;  %v5140_v41 = vpop.f32.mrb[67].mxu1  ;;  %v5145_v7 = vpop.f32.mrb[65].mxu0  ;;  %v4502_v16 = vrot.slane %v4494_v28, %v6018_v22 }
 0x4f7   : > { %v3987_v45 = vpop.f32.mrb[66].mxu0  ;;  %v4534_v54 = vrot.slane %v4526_v59, %v6018_v22  ;;  %v4509_v60 = vrot.slane %v4495_v56, %v6018_v22  ;;  %v4541_v0 = vrot.slane %v4527_v10, %v6018_v22 }
 0x4f8   : > { %v4206_v58 = vcombine.low %v4019_v21, %v4021_v13  ;;  %v4207_v3 = vcombine.high %v4019_v21, %v4021_v13  ;;  %v5146_v29 = vpop.f32.mrb[67].mxu0  ;;  %v4198_v36 = vrot.slane %v4190_v27, %v6010_v12  ;;  %v4205_v48 = vrot.slane %v4191_v44, %v6010_v12 }
 0x4f9   : > { %v4559_v33 = vcombine.high %v4502_v16, %v4534_v54  ;;  %v4558_v39 = vcombine.low %v4502_v16, %v4534_v54  ;;  %v4561_v50 = vcombine.high %v4509_v60, %v4541_v0  ;;  %v4560_v57 = vcombine.low %v4509_v60, %v4541_v0 }
 0x4fa   : > { %v4214_v4 = vrot.slane %v4206_v58, %v6010_v12  ;;  %v4221_v30 = vrot.slane %v4207_v3, %v6010_v12 }
 0x4fb   : > { %4599 = vrot.lane.b32.xlu1 %v4559_v33, %s5572_s15  ;;  %4595 = vrot.lane.b32.xlu0 %v4558_v39, %s5571_s18  ;;  %s7089_s15 = scalar_lea.hbm %s7145_s7, %s4871_s19 }
 0x4fc   : > { %v4254_v17 = vcombine.low %v4198_v36, %v4214_v4  ;;  %v4255_v52 = vcombine.high %v4198_v36, %v4214_v4  ;;  %v4270_v5 = vcombine.low %v4205_v48, %v4221_v30  ;;  %v4271_v8 = vcombine.high %v4205_v48, %v4221_v30 }
 0x4fe   : > { %v4262_v31 = vrot.slane %v4254_v17, %v6018_v22  ;;  %v4269_v53 = vrot.slane %v4255_v52, %v6018_v22  ;;  %v4278_v49 = vrot.slane %v4270_v5, %v6018_v22  ;;  %v4285_v11 = vrot.slane %v4271_v8, %v6018_v22 }
 0x4ff   : > { %4607 = vrot.lane.b32.xlu1 %v4561_v50, %s5570_s3  ;;  %4603 = vrot.lane.b32.xlu0 %v4560_v57, %s5569_s20 }
 0x500   : > { %v4863_v47 = vcombine.low %v4262_v31, %v4269_v53  ;;  %v4865_v9 = vcombine.high %v4262_v31, %v4269_v53  ;;  %v4867_v35 = vcombine.low %v4278_v49, %v4285_v11  ;;  %v4869_v46 = vcombine.high %v4278_v49, %v4285_v11 }
 0x502   : > { %v4445_v63 = vrot.slane %v4863_v47, %v6010_v12  ;;  %v4461_v37 = vrot.slane %v4865_v9, %v6010_v12  ;;  %v4477_v15 = vrot.slane %v4867_v35, %v6010_v12  ;;  %v4493_v23 = vrot.slane %v4869_v46, %v6010_v12 }
 0x504   : > { %v4510_v18 = vcombine.low %v4445_v63, %v4461_v37  ;;  %v4542_v1 = vcombine.low %v4477_v15, %v4493_v23  ;;  %v4511_v24 = vcombine.high %v4445_v63, %v4461_v37  ;;  %v4543_v42 = vcombine.high %v4477_v15, %v4493_v23 }
 0x506   : > { %v4518_v20 = vrot.slane %v4510_v18, %v6018_v22  ;;  %v4550_v61 = vrot.slane %v4542_v1, %v6018_v22  ;;  %v4525_v26 = vrot.slane %v4511_v24, %v6018_v22  ;;  %v4557_v25 = vrot.slane %v4543_v42, %v6018_v22 }
 0x508   : > { %v4563_v43 = vcombine.high %v4518_v20, %v4550_v61  ;;  %v4562_v14 = vcombine.low %v4518_v20, %v4550_v61  ;;  %v4565_v2 = vcombine.high %v4525_v26, %v4557_v25  ;;  %v4564_v62 = vcombine.low %v4525_v26, %v4557_v25 }
 0x50a   : > { %4615 = vrot.lane.b32.xlu1 %v4563_v43, %s5568_s21  ;;  %4611 = vrot.lane.b32.xlu0 %v4562_v14, %s5567_s8  ;;  %s7216_s8 = sshll.u32 %s5853_s12, 3 }
 0x50b   : > { %s390_s21 = scalar_lea.vmem [#allocation11], %s7216_s8 }
 0x50c   : > { %s4669_s20 = sshll.u32 %s390_s21, 4  ;;  %s7091_s20 = int_to_ptr.vmem [resolvable:$true] %s4669_s20 }
 0x50d   : > { %s5458_s0 = scalar_lea.vmem %s7091_s20, 128  ;;  %p5465_p9 = scmp.lt.s32.totalorder %s7091_s20, %s5463_s11 }
 0x50e   : > { %4623 = vrot.lane.b32.xlu1 %v4565_v2, %s7214_s23  ;;  %4619 = vrot.lane.b32.xlu0 %v4564_v62, %s7215_s10  ;;  %p5459_p6 = scmp.ne.s32.totalorder %s7091_s20, %s5458_s0  ;;  %p5466_p5 = scmp.lt.s32.totalorder %s5464_s16, %s5458_s0 }
 0x510   : > { %p5460_p3 = pnand %p5459_p6, %p7217_p10  ;;  %p5467_p7 = por %p5466_p5, %p5465_p9 }
 0x512   : > { %p5461_p4 = pneg %p5460_p3 }
 0x514   : > { %p5468_p11 = pnand %p5467_p7, %p5461_p4 }
 0x53f   : > { %v4572_v12 = vpop.permute.xlu1 %4571  ;;  %v4568_v38 = vpop.permute.xlu0 %4567 }
 0x540   : > { %v4626_v22 = vsel %vm2404_vm3, %v4422_v34, %v4568_v38 }
 0x541   : > { %v4627_v56 = vsel %vm3141_vm4, %v4626_v22, %v4572_v12 }
 0x543   : > { %v4576_v40 = vpop.permute.xlu1 %4575 }
 0x544   : > { %v4629_v32 = vsel %vm4628_vm5, %v4627_v56, %v4576_v40 }
 0x55d   : > { %v4580_v28 = vpop.permute.xlu0 %4579  ;;  %v4584_v59 = vpop.permute.xlu1 %4583 }
 0x55e   : > { %v4630_v19 = vsel %vm525_vm1, %v4629_v32, %v4580_v28 }
 0x55f   : > { %v4632_v10 = vsel %vm4631_vm6, %v4630_v19, %v4584_v59 }
 0x561   : > { %v4588_v21 = vpop.permute.xlu0 %4587  ;;  %v4592_v6 = vpop.permute.xlu1 %4591 }
 0x562   : > { %v4634_v44 = vsel %vm425_vm2, %v4632_v10, %v4588_v21 }
 0x563   : > { %v4636_v51 = vsel %vm4635_vm7, %v4634_v44, %v4592_v6 }
 0x56d   : > { %v4596_v27 = vpop.permute.xlu0 %4595  ;;  %v4600_v13 = vpop.permute.xlu1 %4599 }
 0x56e   : > { %v4638_v55 = vsel %vm4637_vm8, %v4636_v51, %v4596_v27 }
 0x56f   : > { %v4640_v7 = vsel %vm4639_vm9, %v4638_v55, %v4600_v13 }
 0x571   : > { %v4604_v34 = vpop.permute.xlu0 %4603  ;;  %v4608_v41 = vpop.permute.xlu1 %4607 }
 0x572   : > { %v4642_v16 = vsel %vm4641_vm10, %v4640_v7, %v4604_v34 }
 0x573   : > { %v4644_v54 = vsel %vm4643_vm11, %v4642_v16, %v4608_v41 }
 0x57c   : > { %v4616_v45 = vpop.permute.xlu1 %4615  ;;  %v4612_v60 = vpop.permute.xlu0 %4611 }
 0x57d   : > { %v4646_v0 = vsel %vm4645_vm12, %v4644_v54, %v4612_v60 }
 0x57e   : > { %v4648_v3 = vsel %vm4647_vm13, %v4646_v0, %v4616_v45 }
 0x580   : > { %v4624_v58 = vpop.permute.xlu1 %4623  ;;  %v4620_v29 = vpop.permute.xlu0 %4619 }
 0x581   : > { %v4650_v33 = vsel %vm4649_vm14, %v4648_v3, %v4620_v29 }
 0x582   : > { %v4652_v39 = vsel %vm4651_vm15, %v4650_v33, %v4624_v58 }
 0x583   : > { %4653 = vst [vmem:[%s390_s21] sm:$0xff] %v4652_v39 }
 0x584   : > { %5471 = shalt.err (!%p5468_p11)
}
 0x585   : > { %s5472_s12 = scalar_lea.hbm %s7089_s15, 128  ;;  %s5476_s14 = scalar_lea.hbm %s7145_s7, 256 }
 0x586   : > { %p5473_p1 = scmp.ne.s32.totalorder %s7089_s15, %s5472_s12  ;;  %p5477_p13 = scmp.lt.u32.totalorder %s7089_s15, %s7145_s7 }
 0x587   : > { %p5478_p0 = scmp.lt.u32.totalorder %s5476_s14, %s5472_s12  ;;  %p5480_p6 = scmp.lt.u32.totalorder %s5472_s12, %s7089_s15 }
 0x588   : > { %p5474_p8 = pnand %p5473_p1, %p7217_p10 }
 0x589   : > { %p5479_p2 = por %p5478_p0, %p5477_p13 }
 0x58a   : > { %p5475_p12 = pneg %p5474_p8 }
 0x58b   : > { %p5481_p3 = por %p5480_p6, %p5479_p2 }
 0x58d   : > { %p5482_p4 = pnand %p5481_p3, %p5475_p12 }
 0x58f   : > { %5485 = shalt.err (!%p5482_p4)
}
 0x590   : > { %5177 = dma.vmem_to_hbm [thread:$0]  (%p7217_p10), %s7091_s20, 128, %s7089_s15, %s4655_s27  }
 0x591 PF: > { %s7218_s10 = sld [smem:[#allocation17_spill]]  ;;  %s4681_s19 = sand.u32 1, %s5532_s24  }
 0x592   : > { %p7220_p5 = scmp.ge.s32.totalorder %s5552_s29, 2  ;;  %s4682_s8 = scalar_lea.sflag [#allocation5], %s4681_s19 }
 0x597   : > { %p7219_p9 = scmp.ne.s32.totalorder %s7218_s10, 0 }
 0x599   : > { %p5194_p7 = pnand %p7220_p5, %p7219_p9 }
 0x59b   : > { %5527 = dma.done.wait (!%p5194_p7), %s4682_s8, 128  }
 0x59c   : > { %5529 = vsyncadd (!%p5194_p7), %s4682_s8, 4294967168  ;;  %s27_s29 = sadd.s32 1, %s5552_s29   ;;  %s7221_s22 = sld [smem:[#allocation18_spill]] }
 0x59d   : > { %p24_p11 = scmp.ge.s32.totalorder %s27_s29, 4   ;;  %s7222_s24 = smov %s5536_s25 }
 0x59e   : > { %s7223_s25 = smov %s5540_s26  ;;  %s7224_s26 = smov %s5768_s13 }
 0x59f   : > { %s7225_s27 = smov %s5548_s28  ;;  %26 = sbr.rel (!%p24_p11) target bundleno = 13 (0xd), region = 121 }
 0x5a2   : > { %s7226_s28 = smov %s7221_s22 }
 0x5a6   :  { %4687 = vsyncpa [#allocation4], 1 }
 0x5a7   :  { %4689 = vsyncpa [#allocation4 + $0x1], 1 }
 0x5a8   :  { %4690 = vsyncpa [#allocation7], 1 }
 0x5a9   :  { %4692 = vsyncpa [#allocation7 + $0x1], 1 }
 0x5aa   :  { %4693 = vsyncpa [#allocation10], 1 }
 0x5ab   :  { %4694 = vsyncpa [#allocation5], 1 }
 0x5ac   :  { %4696 = vsyncpa [#allocation5 + $0x1], 1 }

</bundles_post_ra>
